<compile_context>
chip_gen: v7x
topology: tpu7x:2x2x1
jax: 0.10.0
libtpu: 0.0.40
codegen_flags: <defaults>
</compile_context>

<pallas_src>
import functools

import jax
import jax.numpy as jnp
from jax.experimental import pallas as pl
from jax.experimental.pallas import tpu as pltpu


def _round_up(x, m):
    return (x + m - 1) // m * m


# ----------------------------------------------------------------------------
# Kernel bodies
# ----------------------------------------------------------------------------
def _mlp_f32_out(x_ref, w1_ref, b1_ref, w2_ref, b2_ref, w3_ref, b3_ref,
                 w4_ref, b4_ref):
    """bf16 matmuls, f32 accumulation. Returns (tile, SLAB_W) f32."""
    h = jnp.dot(x_ref[...], w1_ref[...], preferred_element_type=jnp.float32)
    h = jnp.maximum(h + b1_ref[...], 0.0).astype(jnp.bfloat16)
    h = jnp.dot(h, w2_ref[...], preferred_element_type=jnp.float32)
    h = jnp.maximum(h + b2_ref[...], 0.0).astype(jnp.bfloat16)
    h = jnp.dot(h, w3_ref[...], preferred_element_type=jnp.float32)
    h = jnp.maximum(h + b3_ref[...], 0.0).astype(jnp.bfloat16)
    out = jnp.dot(h, w4_ref[...], preferred_element_type=jnp.float32)
    return out + b4_ref[...]


def _clamped_slab(out, z_size):
    # slab layout: [:Z] = loc, [Z:2Z] = clamp(logs, -7), rest = zero padding
    # (zero because the padded w4/b4 columns are zero).
    col = jax.lax.broadcasted_iota(jnp.int32, out.shape, 1)
    is_logs = jnp.logical_and(col >= z_size, col < 2 * z_size)
    return jnp.where(is_logs, jnp.maximum(out, -7.0), out)


def _sve_eval_kernel(z_size,
                     x_ref, w1_ref, b1_ref, w2_ref, b2_ref, w3_ref, b3_ref,
                     w4_ref, b4_ref, out_ref):
    out = _mlp_f32_out(x_ref, w1_ref, b1_ref, w2_ref, b2_ref, w3_ref, b3_ref,
                       w4_ref, b4_ref)
    # One full-width, unmasked lane-dense store.
    out_ref[...] = _clamped_slab(out, z_size)


def _sve_train_kernel(z_size,
                      x_ref, noise_ref, w1_ref, b1_ref, w2_ref, b2_ref,
                      w3_ref, b3_ref, w4_ref, b4_ref, out_ref):
    out = _mlp_f32_out(x_ref, w1_ref, b1_ref, w2_ref, b2_ref, w3_ref, b3_ref,
                       w4_ref, b4_ref)
    out_ref[...] = _clamped_slab(out, z_size)          # [loc | logs | 0...]
    loc = out[:, :z_size]
    logs = jnp.maximum(out[:, z_size:2 * z_size], -7.0)
    # reparameterization: style = eps * exp(logs) + loc, written into the
    # zero-padded columns [2Z:3Z) of the same slab.
    out_ref[:, 2 * z_size:3 * z_size] = noise_ref[...] * jnp.exp(logs) + loc


# ----------------------------------------------------------------------------
# pallas_call wrapper
# ----------------------------------------------------------------------------
def _run_sve(x_pad, noise_pad, packed_params, *, z_size, row_tile):
    """x_pad: (N_pad, C_pad) bf16; noise_pad: (N_pad, Z) f32 or None.

    Returns a (N_pad, SLAB_W) f32 slab:
      eval : [loc | logs | 0 ...]
      train: [loc | logs | style | 0 ...]
    """
    n_pad, c_pad = x_pad.shape
    slab_w = packed_params[3][0].shape[1]          # padded out-width of layer 4
    grid = (n_pad // row_tile,)

    def row_spec(width):
        return pl.BlockSpec((row_tile, width), lambda i: (i, 0))

    def full_spec(a):
        return pl.BlockSpec(a.shape, lambda i: (0,) * a.ndim)

    weight_specs, weight_args = [], []
    for w, b in packed_params:
        weight_specs += [full_spec(w), full_spec(b)]
        weight_args += [w, b]

    if noise_pad is not None:
        kernel = functools.partial(_sve_train_kernel, z_size)
        in_specs = [row_spec(c_pad), row_spec(z_size)] + weight_specs
        args = [x_pad, noise_pad] + weight_args
    else:
        kernel = functools.partial(_sve_eval_kernel, z_size)
        in_specs = [row_spec(c_pad)] + weight_specs
        args = [x_pad] + weight_args

    return pl.pallas_call(
        kernel,
        grid=grid,
        in_specs=in_specs,
        out_specs=pl.BlockSpec((row_tile, slab_w), lambda i: (i, 0)),
        out_shape=jax.ShapeDtypeStruct((n_pad, slab_w), jnp.float32),
        compiler_params=pltpu.CompilerParams(
            dimension_semantics=("parallel",)),
    )(*args)


# ----------------------------------------------------------------------------
# Parameter packing: pad to MXU/lane-friendly shapes, cast weights to bf16
# ----------------------------------------------------------------------------
def prepare_params(params, *, z_size):
    (w1, b1), (w2, b2), (w3, b3), (w4, b4) = params
    c_in = w1.shape[0]
    out_dim = w4.shape[1]
    assert out_dim == 2 * z_size
    c_pad = _round_up(c_in, 128)
    slab_w = _round_up(3 * z_size, 128)            # [loc|logs|style|pad]

    def _b(b, pad_to=None):
        b = jnp.asarray(b, jnp.float32).reshape(1, -1)
        if pad_to is not None:
            b = jnp.pad(b, ((0, 0), (0, pad_to - b.shape[1])))
        return b

    w1p = jnp.pad(w1, ((0, c_pad - c_in), (0, 0))).astype(jnp.bfloat16)
    w4p = jnp.pad(w4, ((0, 0), (0, slab_w - out_dim))).astype(jnp.bfloat16)
    packed = [(w1p, _b(b1)),
              (w2.astype(jnp.bfloat16), _b(b2)),
              (w3.astype(jnp.bfloat16), _b(b3)),
              (w4p, _b(b4, pad_to=slab_w))]
    return packed, c_pad


# ----------------------------------------------------------------------------
# Module wrapper (fold / unfold + gaussian sampling are glue)
# ----------------------------------------------------------------------------
def style_variational_encoder_forward(style_ref, params, *, z_size,
                                      training=False, rng=None, row_tile=256):
    frm = None
    if style_ref.ndim == 3:                        # fold: (B, T, C) -> (B*T, C)
        b, t, c = style_ref.shape
        frm = t
        style_ref = style_ref.reshape(b * t, c)
    assert style_ref.ndim == 2
    n, c_in = style_ref.shape

    packed, c_pad = prepare_params(params, z_size=z_size)
    n_pad = _round_up(n, row_tile)                 # pad rows instead of asserting
    x_pad = jnp.pad(style_ref.astype(jnp.bfloat16),
                    ((0, n_pad - n), (0, c_pad - c_in)))

    if training:
        assert rng is not None
        # TODO(synk): noise is drawn host-side (jax.random.normal) instead of
        # in-kernel (pltpu.stateful_normal) to keep the check deterministic.
        noise = jax.random.normal(rng, (n, z_size), dtype=jnp.float32)
        noise_pad = jnp.pad(noise, ((0, n_pad - n), (0, 0)))
        slab = _run_sve(x_pad, noise_pad, packed, z_size=z_size, row_tile=row_tile)
        loc = slab[:n, 0 * z_size:1 * z_size]
        logs = slab[:n, 1 * z_size:2 * z_size]
        style_embed = slab[:n, 2 * z_size:3 * z_size]
    else:
        slab = _run_sve(x_pad, None, packed, z_size=z_size, row_tile=row_tile)
        loc = slab[:n, 0 * z_size:1 * z_size]
        logs = slab[:n, 1 * z_size:2 * z_size]
        style_embed = loc                          # eval: style_embed == loc

    if frm is not None:                            # unfold: (B*T, Z) -> (B, T, Z)
        style_embed = style_embed.reshape(-1, frm, z_size)
        loc = loc.reshape(-1, frm, z_size)
        logs = logs.reshape(-1, frm, z_size)
    return style_embed, (loc, logs)


# ----------------------------------------------------------------------------
# Deterministic parameter init (synthetic; shapes from MLP(C_in,[256,256,256,2Z]))
# ----------------------------------------------------------------------------
def init_params(key, in_channels, z_size):
    dims = [in_channels, 256, 256, 256, 2 * z_size]
    params = []
    for i in range(4):
        key, kw, kb = jax.random.split(key, 3)
        fan_in = dims[i]
        w = jax.random.normal(kw, (dims[i], dims[i + 1]), jnp.float32) / jnp.sqrt(fan_in)
        b = 0.01 * jax.random.normal(kb, (1, dims[i + 1]), jnp.float32)
        params.append((w, b))
    return params


# ----------------------------------------------------------------------------
# Pure-JAX reference (same bf16-in / f32-accumulate recipe as the kernel)
# ----------------------------------------------------------------------------
def _ref_forward(x2d, noise2d, params, z_size):
    h = x2d.astype(jnp.bfloat16)
    for i, (w, b) in enumerate(params):
        h = jnp.dot(h, w.astype(jnp.bfloat16),
                    preferred_element_type=jnp.float32) + b.reshape(1, -1)
        if i < 3:
            h = jnp.maximum(h, 0.0).astype(jnp.bfloat16)
    loc = h[:, :z_size]
    logs = jnp.maximum(h[:, z_size:], -7.0)
    style = loc if noise2d is None else noise2d * jnp.exp(logs) + loc
    return style, loc, logs


if __name__ == "__main__":
    key = jax.random.PRNGKey(0)
    B, T, C_IN, Z = 2, 8, 64, 16

    k_param, k_x, k_noise = jax.random.split(key, 3)
    params = init_params(k_param, C_IN, Z)
    style_ref = jax.random.normal(k_x, (B, T, C_IN), jnp.float32)
    x2d = style_ref.reshape(B * T, C_IN)

    # ---- eval mode: no noise input; style_embed == loc exactly ----
    style_e, (loc_e, logs_e) = style_variational_encoder_forward(
        style_ref, params, z_size=Z, training=False)
    jax.block_until_ready((style_e, loc_e, logs_e))

    ref_style_e, ref_loc_e, ref_logs_e = _ref_forward(x2d, None, params, Z)
    assert style_e.shape == (B, T, Z)
    assert loc_e.shape == (B, T, Z) and logs_e.shape == (B, T, Z)
    assert jnp.allclose(loc_e.reshape(B * T, Z), ref_loc_e, atol=5e-3, rtol=5e-3)
    assert jnp.allclose(logs_e.reshape(B * T, Z), ref_logs_e, atol=5e-3, rtol=5e-3)
    assert jnp.allclose(style_e, loc_e)

    # ---- training mode: reparameterized sample (wrapper-supplied gaussian) ----
    style_t, (loc_t, logs_t) = style_variational_encoder_forward(
        style_ref, params, z_size=Z, training=True, rng=k_noise)
    jax.block_until_ready((style_t, loc_t, logs_t))

    noise = jax.random.normal(k_noise, (B * T, Z), dtype=jnp.float32)
    ref_style_t, ref_loc_t, ref_logs_t = _ref_forward(x2d, noise, params, Z)
    assert jnp.allclose(loc_t.reshape(B * T, Z), ref_loc_t, atol=5e-3, rtol=5e-3)
    assert jnp.allclose(logs_t.reshape(B * T, Z), ref_logs_t, atol=5e-3, rtol=5e-3)
    assert jnp.allclose(style_t.reshape(B * T, Z), ref_style_t, atol=1e-2, rtol=1e-2)

    print("KERNEL_OK")
</pallas_src>

<mosaic_0001>
module attributes {stable_mosaic.version = 11 : i64} {
  func.func @_sve_eval_kernel(%arg0: i32, %arg1: memref<256x128xbf16, #tpu.memory_space<vmem>>, %arg2: memref<128x256xbf16, #tpu.memory_space<vmem>>, %arg3: memref<1x256xf32, #tpu.memory_space<vmem>>, %arg4: memref<256x256xbf16, #tpu.memory_space<vmem>>, %arg5: memref<1x256xf32, #tpu.memory_space<vmem>>, %arg6: memref<256x256xbf16, #tpu.memory_space<vmem>>, %arg7: memref<1x256xf32, #tpu.memory_space<vmem>>, %arg8: memref<256x128xbf16, #tpu.memory_space<vmem>>, %arg9: memref<1x128xf32, #tpu.memory_space<vmem>>, %arg10: memref<256x128xf32, #tpu.memory_space<vmem>>) attributes {dimension_semantics = [#tpu.dimension_semantics<parallel>], iteration_bounds = array<i64: 1>, scalar_prefetch = 0 : i64, scratch_operands = 0 : i64, tpu.core_type = #tpu.core_type<tc>, window_params = [{transform_indices = @transform_0, window_bounds = array<i64: 256, 128>}, {pipeline_mode = #tpu.pipeline_mode<synchronous>, transform_indices = @transform_1, window_bounds = array<i64: 128, 256>}, {pipeline_mode = #tpu.pipeline_mode<synchronous>, transform_indices = @transform_2, window_bounds = array<i64: 1, 256>}, {pipeline_mode = #tpu.pipeline_mode<synchronous>, transform_indices = @transform_3, window_bounds = array<i64: 256, 256>}, {pipeline_mode = #tpu.pipeline_mode<synchronous>, transform_indices = @transform_4, window_bounds = array<i64: 1, 256>}, {pipeline_mode = #tpu.pipeline_mode<synchronous>, transform_indices = @transform_5, window_bounds = array<i64: 256, 256>}, {pipeline_mode = #tpu.pipeline_mode<synchronous>, transform_indices = @transform_6, window_bounds = array<i64: 1, 256>}, {pipeline_mode = #tpu.pipeline_mode<synchronous>, transform_indices = @transform_7, window_bounds = array<i64: 256, 128>}, {pipeline_mode = #tpu.pipeline_mode<synchronous>, transform_indices = @transform_8, window_bounds = array<i64: 1, 128>}, {transform_indices = @transform_9, window_bounds = array<i64: 256, 128>}]} {
    %c0 = arith.constant 0 : index
    %c0_0 = arith.constant 0 : index
    %0 = vector.load %arg1[%c0, %c0_0] : memref<256x128xbf16, #tpu.memory_space<vmem>>, vector<256x128xbf16>
    %c0_1 = arith.constant 0 : index
    %c0_2 = arith.constant 0 : index
    %1 = vector.load %arg2[%c0_1, %c0_2] : memref<128x256xbf16, #tpu.memory_space<vmem>>, vector<128x256xbf16>
    %cst = arith.constant dense<0.000000e+00> : vector<256x256xf32>
    %2 = tpu.matmul %0, %1, %cst {dimension_numbers = #tpu.dot_dimension_numbers<[1], [0], [0], [1], [0, 0, 1, 1], [], []>} : vector<256x128xbf16>, vector<128x256xbf16>, vector<256x256xf32> -> vector<256x256xf32>
    %c0_3 = arith.constant 0 : index
    %c0_4 = arith.constant 0 : index
    %3 = vector.load %arg3[%c0_3, %c0_4] : memref<1x256xf32, #tpu.memory_space<vmem>>, vector<1x256xf32>
    %4 = vector.broadcast %3 : vector<1x256xf32> to vector<256x256xf32>
    %5 = arith.addf %2, %4 : vector<256x256xf32>
    %cst_5 = arith.constant 0.000000e+00 : f32
    %6 = vector.broadcast %cst_5 : f32 to vector<256x256xf32>
    %7 = arith.maximumf %5, %6 : vector<256x256xf32>
    %8 = arith.truncf %7 : vector<256x256xf32> to vector<256x256xbf16>
    %c0_6 = arith.constant 0 : index
    %c0_7 = arith.constant 0 : index
    %9 = vector.load %arg4[%c0_6, %c0_7] : memref<256x256xbf16, #tpu.memory_space<vmem>>, vector<256x256xbf16>
    %cst_8 = arith.constant dense<0.000000e+00> : vector<256x256xf32>
    %10 = tpu.matmul %8, %9, %cst_8 {dimension_numbers = #tpu.dot_dimension_numbers<[1], [0], [0], [1], [0, 0, 1, 1], [], []>} : vector<256x256xbf16>, vector<256x256xbf16>, vector<256x256xf32> -> vector<256x256xf32>
    %c0_9 = arith.constant 0 : index
    %c0_10 = arith.constant 0 : index
    %11 = vector.load %arg5[%c0_9, %c0_10] : memref<1x256xf32, #tpu.memory_space<vmem>>, vector<1x256xf32>
    %12 = vector.broadcast %11 : vector<1x256xf32> to vector<256x256xf32>
    %13 = arith.addf %10, %12 : vector<256x256xf32>
    %cst_11 = arith.constant 0.000000e+00 : f32
    %14 = vector.broadcast %cst_11 : f32 to vector<256x256xf32>
    %15 = arith.maximumf %13, %14 : vector<256x256xf32>
    %16 = arith.truncf %15 : vector<256x256xf32> to vector<256x256xbf16>
    %c0_12 = arith.constant 0 : index
    %c0_13 = arith.constant 0 : index
    %17 = vector.load %arg6[%c0_12, %c0_13] : memref<256x256xbf16, #tpu.memory_space<vmem>>, vector<256x256xbf16>
    %cst_14 = arith.constant dense<0.000000e+00> : vector<256x256xf32>
    %18 = tpu.matmul %16, %17, %cst_14 {dimension_numbers = #tpu.dot_dimension_numbers<[1], [0], [0], [1], [0, 0, 1, 1], [], []>} : vector<256x256xbf16>, vector<256x256xbf16>, vector<256x256xf32> -> vector<256x256xf32>
    %c0_15 = arith.constant 0 : index
    %c0_16 = arith.constant 0 : index
    %19 = vector.load %arg7[%c0_15, %c0_16] : memref<1x256xf32, #tpu.memory_space<vmem>>, vector<1x256xf32>
    %20 = vector.broadcast %19 : vector<1x256xf32> to vector<256x256xf32>
    %21 = arith.addf %18, %20 : vector<256x256xf32>
    %cst_17 = arith.constant 0.000000e+00 : f32
    %22 = vector.broadcast %cst_17 : f32 to vector<256x256xf32>
    %23 = arith.maximumf %21, %22 : vector<256x256xf32>
    %24 = arith.truncf %23 : vector<256x256xf32> to vector<256x256xbf16>
    %c0_18 = arith.constant 0 : index
    %c0_19 = arith.constant 0 : index
    %25 = vector.load %arg8[%c0_18, %c0_19] : memref<256x128xbf16, #tpu.memory_space<vmem>>, vector<256x128xbf16>
    %cst_20 = arith.constant dense<0.000000e+00> : vector<256x128xf32>
    %26 = tpu.matmul %24, %25, %cst_20 {dimension_numbers = #tpu.dot_dimension_numbers<[1], [0], [0], [1], [0, 0, 1, 1], [], []>} : vector<256x256xbf16>, vector<256x128xbf16>, vector<256x128xf32> -> vector<256x128xf32>
    %c0_21 = arith.constant 0 : index
    %c0_22 = arith.constant 0 : index
    %27 = vector.load %arg9[%c0_21, %c0_22] : memref<1x128xf32, #tpu.memory_space<vmem>>, vector<1x128xf32>
    %28 = vector.broadcast %27 : vector<1x128xf32> to vector<256x128xf32>
    %29 = arith.addf %26, %28 : vector<256x128xf32>
    %30 = tpu.iota {dimensions = array<i32: 1>} : vector<256x128xi32>
    %c16_i32 = arith.constant 16 : i32
    %31 = vector.broadcast %c16_i32 : i32 to vector<256x128xi32>
    %32 = arith.cmpi sge, %30, %31 : vector<256x128xi32>
    %c32_i32 = arith.constant 32 : i32
    %33 = vector.broadcast %c32_i32 : i32 to vector<256x128xi32>
    %34 = arith.cmpi slt, %30, %33 : vector<256x128xi32>
    %35 = arith.andi %32, %34 : vector<256x128xi1>
    %cst_23 = arith.constant -7.000000e+00 : f32
    %36 = vector.broadcast %cst_23 : f32 to vector<256x128xf32>
    %37 = arith.maximumf %29, %36 : vector<256x128xf32>
    %38 = arith.select %35, %37, %29 : vector<256x128xi1>, vector<256x128xf32>
    %c0_24 = arith.constant 0 : index
    %c0_25 = arith.constant 0 : index
    %39 = vector.load %arg10[%c0_24, %c0_25] : memref<256x128xf32, #tpu.memory_space<vmem>>, vector<256x128xf32>
    tpu.vector_store %arg10[%c0_24, %c0_25], %38 {strides = array<i32>} : memref<256x128xf32, #tpu.memory_space<vmem>>, vector<256x128xf32>,
    return
  }
  func.func @transform_0(%arg0: i32) -> (i32, i32) {
    %c0_i32 = arith.constant 0 : i32
    %c0_i32_0 = arith.constant 0 : i32
    return %arg0, %c0_i32 : i32, i32
  }
  func.func @transform_1(%arg0: i32) -> (i32, i32) {
    %c0_i32 = arith.constant 0 : i32
    %c0_i32_0 = arith.constant 0 : i32
    %c0_i32_1 = arith.constant 0 : i32
    return %c0_i32, %c0_i32_0 : i32, i32
  }
  func.func @transform_2(%arg0: i32) -> (i32, i32) {
    %c0_i32 = arith.constant 0 : i32
    %c0_i32_0 = arith.constant 0 : i32
    %c0_i32_1 = arith.constant 0 : i32
    return %c0_i32, %c0_i32_0 : i32, i32
  }
  func.func @transform_3(%arg0: i32) -> (i32, i32) {
    %c0_i32 = arith.constant 0 : i32
    %c0_i32_0 = arith.constant 0 : i32
    %c0_i32_1 = arith.constant 0 : i32
    return %c0_i32, %c0_i32_0 : i32, i32
  }
  func.func @transform_4(%arg0: i32) -> (i32, i32) {
    %c0_i32 = arith.constant 0 : i32
    %c0_i32_0 = arith.constant 0 : i32
    %c0_i32_1 = arith.constant 0 : i32
    return %c0_i32, %c0_i32_0 : i32, i32
  }
  func.func @transform_5(%arg0: i32) -> (i32, i32) {
    %c0_i32 = arith.constant 0 : i32
    %c0_i32_0 = arith.constant 0 : i32
    %c0_i32_1 = arith.constant 0 : i32
    return %c0_i32, %c0_i32_0 : i32, i32
  }
  func.func @transform_6(%arg0: i32) -> (i32, i32) {
    %c0_i32 = arith.constant 0 : i32
    %c0_i32_0 = arith.constant 0 : i32
    %c0_i32_1 = arith.constant 0 : i32
    return %c0_i32, %c0_i32_0 : i32, i32
  }
  func.func @transform_7(%arg0: i32) -> (i32, i32) {
    %c0_i32 = arith.constant 0 : i32
    %c0_i32_0 = arith.constant 0 : i32
    %c0_i32_1 = arith.constant 0 : i32
    return %c0_i32, %c0_i32_0 : i32, i32
  }
  func.func @transform_8(%arg0: i32) -> (i32, i32) {
    %c0_i32 = arith.constant 0 : i32
    %c0_i32_0 = arith.constant 0 : i32
    %c0_i32_1 = arith.constant 0 : i32
    return %c0_i32, %c0_i32_0 : i32, i32
  }
  func.func @transform_9(%arg0: i32) -> (i32, i32) {
    %c0_i32 = arith.constant 0 : i32
    %c0_i32_0 = arith.constant 0 : i32
    return %arg0, %c0_i32 : i32, i32
  }
}

</mosaic_0001>

<bundles_post_ra>
// kernel: tpu_custom_call.1
= control target key start
LH: loop header
LB: loop body
LE: loop exit
PB: predicated region body
PF: predicated region fallthrough
CT: control target
= control target key end

     0   :  { %14 = vsyncpa [#allocation3], 0  ;;  %s3070_s0 = inlined_call_operand.hbm [shape: bf16[256,128], index: 0, kind: input, shape index: {}]   ;;  %s3071_s1 = inlined_call_operand.hbm [shape: bf16[128,256], index: 1, kind: input, shape index: {}]   ;;  %s3072_s2 = inlined_call_operand.vmem [shape: f32[1,256], index: 2, kind: input, shape index: {}]   ;;  %s3073_s3 = inlined_call_operand.hbm [shape: bf16[256,256], index: 3, kind: input, shape index: {}]   ;;  %s3074_s4 = inlined_call_operand.vmem [shape: f32[1,256], index: 4, kind: input, shape index: {}]   ;;  %s3075_s5 = inlined_call_operand.hbm [shape: bf16[256,256], index: 5, kind: input, shape index: {}]   ;;  %s3076_s6 = inlined_call_operand.vmem [shape: f32[1,256], index: 6, kind: input, shape index: {}]   ;;  %s3077_s7 = inlined_call_operand.hbm [shape: bf16[256,128], index: 7, kind: input, shape index: {}]   ;;  %s3078_s8 = inlined_call_operand.vmem [shape: f32[1,128], index: 8, kind: input, shape index: {}]   ;;  %s3079_s9 = inlined_call_operand.hbm [shape: f32[256,128], index: 9, kind: output, shape index: {}]  }
   0x1   :  { %15 = vsyncpa [#allocation6], 0 }
   0x2   :  { %16 = vsyncpa [#allocation9], 0 }
   0x3   :  { %17 = vsyncpa [#allocation4], 0  ;;  %s2573_s30 = smov [#allocation5]   ;;  %s2433_s13 = scalar_lea.hbm %s3071_s1, 2048 }
   0x4   :  { %s35_s10 = sshll.u32 %s2573_s30, 4  ;;  %p2434_p0 = scmp.ne.s32.totalorder %s3071_s1, %s2433_s13  ;;  %s36_s10 = int_to_ptr.vmem [resolvable:$true] %s35_s10 }
   0x5   :  { %p2437_p1 = scmp.lt.u32.totalorder %s2433_s13, %s3071_s1 }
   0x7   :  { %p2439_p2 = pnand %p2437_p1, %p2434_p0 }
   0x9   :  { %2442 = shalt.err (!%p2439_p2)
}
   0xa   :  { %s2443_s18 = scalar_lea.vmem %s36_s10, 2048  ;;  %p2448_p4 = scmp.lt.s32.totalorder %s36_s10, %s36_s10 }
   0xb   :  { %p2444_p3 = scmp.ne.s32.totalorder %s36_s10, %s2443_s18  ;;  %p2449_p5 = scmp.lt.s32.totalorder %s2443_s18, %s2443_s18 }
   0xd   :  { %p2450_p6 = por %p2449_p5, %p2448_p4 }
   0xf   :  { %p2451_p7 = pnand %p2450_p6, %p2444_p3 }
  0x11   :  { %2454 = shalt.err (!%p2451_p7)
}
  0x12   :  { %s2574_s19 = smov 128   ;;  %s2575_s20 = smov 8  }
  0x13   :  { %41 = dma.hbm_to_vmem [thread:$0]  %s3071_s1, 2048, %s36_s10, [#allocation6], %s2574_s19, %s2574_s19, %s2575_s20  }
  0x14   :  { %s2576_s23 = smov [#allocation8]   ;;  %s2577_s25 = smov [#allocation2]  }
  0x15   :  { %s63_s24 = sshll.u32 %s2576_s23, 4  ;;  %s23_s26 = sshll.u32 %s2577_s25, 4  ;;  %s64_s24 = int_to_ptr.vmem [resolvable:$true] %s63_s24  ;;  %s24_s26 = int_to_ptr.vmem [resolvable:$true] %s23_s26 }
  0x16   :  { %s2455_s29 = scalar_lea.hbm %s3075_s5, 4096 }
  0x17   :  { %p2456_p8 = scmp.ne.s32.totalorder %s3075_s5, %s2455_s29  ;;  %p2459_p9 = scmp.lt.u32.totalorder %s2455_s29, %s3075_s5 }
  0x19   :  { %p2461_p10 = pnand %p2459_p9, %p2456_p8 }
  0x1b   :  { %2464 = shalt.err (!%p2461_p10)
}
  0x1c   :  { %s2465_s1 = scalar_lea.vmem %s64_s24, 4096  ;;  %p2470_p12 = scmp.lt.s32.totalorder %s64_s24, %s64_s24 }
  0x1d   :  { %p2466_p11 = scmp.ne.s32.totalorder %s64_s24, %s2465_s1  ;;  %p2471_p13 = scmp.lt.s32.totalorder %s2465_s1, %s2465_s1 }
  0x1f   :  { %p2472_p0 = por %p2471_p13, %p2470_p12 }
  0x21   :  { %p2473_p1 = pnand %p2472_p0, %p2466_p11 }
  0x23   :  { %2476 = shalt.err (!%p2473_p1)
}
  0x24   :  { %69 = dma.hbm_to_vmem [thread:$0]  %s3075_s5, 4096, %s64_s24, [#allocation9], %s2574_s19, %s2574_s19, %s2575_s20  }
  0x25   :  { %s2477_s17 = scalar_lea.hbm %s3070_s0, 2048 }
  0x26   :  { %p2478_p2 = scmp.ne.s32.totalorder %s3070_s0, %s2477_s17  ;;  %p2481_p3 = scmp.lt.u32.totalorder %s2477_s17, %s3070_s0 }
  0x28   :  { %p2483_p4 = pnand %p2481_p3, %p2478_p2 }
  0x2a   :  { %2486 = shalt.err (!%p2483_p4)
}
  0x2b   :  { %s2487_s25 = scalar_lea.vmem %s24_s26, 2048  ;;  %p2492_p6 = scmp.lt.s32.totalorder %s24_s26, %s24_s26 }
  0x2c   :  { %p2488_p5 = scmp.ne.s32.totalorder %s24_s26, %s2487_s25  ;;  %p2493_p7 = scmp.lt.s32.totalorder %s2487_s25, %s2487_s25 }
  0x2e   :  { %p2494_p8 = por %p2493_p7, %p2492_p6 }
  0x30   :  { %p2495_p9 = pnand %p2494_p8, %p2488_p5 }
  0x32   :  { %2498 = shalt.err (!%p2495_p9)
}
  0x33   :  { %s2578_s5 = smov 64   ;;  %s2579_s24 = smov 4  }
  0x34   :  { %29 = dma.hbm_to_vmem [thread:$0]  %s3070_s0, 2048, %s24_s26, [#allocation3], %s2578_s5, %s2578_s5, %s2579_s24  }
  0x35   :  { %s2580_s29 = smov [#allocation7]   ;;  %s2581_s11 = smov [#allocation10]  }
  0x36   :  { %s49_s30 = sshll.u32 %s2580_s29, 4  ;;  %s77_s12 = sshll.u32 %s2581_s11, 4  ;;  %s50_s30 = int_to_ptr.vmem [resolvable:$true] %s49_s30  ;;  %s78_s12 = int_to_ptr.vmem [resolvable:$true] %s77_s12 }
  0x37   :  { %s2499_s10 = scalar_lea.hbm %s3073_s3, 4096 }
  0x38   :  { %p2500_p10 = scmp.ne.s32.totalorder %s3073_s3, %s2499_s10  ;;  %p2503_p11 = scmp.lt.u32.totalorder %s2499_s10, %s3073_s3 }
  0x3a   :  { %p2505_p12 = pnand %p2503_p11, %p2500_p10 }
  0x3c   :  { %2508 = shalt.err (!%p2505_p12)
}
  0x3d   :  { %s2509_s0 = scalar_lea.vmem %s50_s30, 4096  ;;  %p2514_p0 = scmp.lt.s32.totalorder %s50_s30, %s50_s30 }
  0x3e   :  { %p2510_p13 = scmp.ne.s32.totalorder %s50_s30, %s2509_s0  ;;  %p2515_p1 = scmp.lt.s32.totalorder %s2509_s0, %s2509_s0 }
  0x40   :  { %p2516_p2 = por %p2515_p1, %p2514_p0 }
  0x42   :  { %p2517_p3 = pnand %p2516_p2, %p2510_p13 }
  0x44   :  { %2520 = shalt.err (!%p2517_p3)
}
  0x45   :  { %55 = dma.hbm_to_vmem [thread:$0]  %s3073_s3, 4096, %s50_s30, [#allocation6], %s2574_s19, %s2574_s19, %s2575_s20  }
  0x46   :  { %s2521_s23 = scalar_lea.hbm %s3077_s7, 2048 }
  0x47   :  { %p2522_p4 = scmp.ne.s32.totalorder %s3077_s7, %s2521_s23  ;;  %p2525_p5 = scmp.lt.u32.totalorder %s2521_s23, %s3077_s7 }
  0x49   :  { %p2527_p6 = pnand %p2525_p5, %p2522_p4 }
  0x4b   :  { %2530 = shalt.err (!%p2527_p6)
}
  0x4c   :  { %s2531_s11 = scalar_lea.vmem %s78_s12, 2048  ;;  %p2536_p8 = scmp.lt.s32.totalorder %s78_s12, %s78_s12 }
  0x4d   :  { %p2532_p7 = scmp.ne.s32.totalorder %s78_s12, %s2531_s11  ;;  %p2537_p9 = scmp.lt.s32.totalorder %s2531_s11, %s2531_s11 }
  0x4f   :  { %p2538_p10 = por %p2537_p9, %p2536_p8 }
  0x51   :  { %p2539_p11 = pnand %p2538_p10, %p2532_p7 }
  0x53   :  { %2542 = shalt.err (!%p2539_p11)
}
  0x54   :  { %83 = dma.hbm_to_vmem [thread:$0]  %s3077_s7, 2048, %s78_s12, [#allocation9], %s2578_s5, %s2578_s5, %s2579_s24  }
  0x55   :  { %2565 = dma.done.wait [#allocation3], 2048  }
  0x56   :  { %2566 = vsyncadd [#allocation3], 4294965248 }
  0x57   :  { %2567 = dma.done.wait [#allocation6], 6144  }
  0x58   :  { %2568 = vsyncadd [#allocation6], 4294961152 }
  0x59   :  { %2569 = dma.done.wait [#allocation9], 6144  }
  0x5a   :  { %2570 = vsyncadd [#allocation9], 4294961152  ;;  %v2582_v0 = vmov 0   ;;  %v2281_v1 = vld [vmem:[#allocation5 + $0x4] ss:$8 sps:$4 sm:$0xff]   ;;  %v2307_v30 = vld [vmem:[#allocation2 + $0x10] sm:$0xff]  }
  0x5b   :  { %370 = vmatprep.mubr.bf16.mxu0 %v2582_v0  ;;  %v2283_v2 = vld [vmem:[#allocation5] ss:$8 sps:$4 sm:$0xff]   ;;  %338 = vmatprep.subr.bf16.mxu0 %v2281_v1  ;;  %v2284_v3 = vld [vmem:[#allocation5 + $0x14] ss:$8 sps:$4 sm:$0xff]   ;;  %v2286_v4 = vld [vmem:[#allocation5 + $0x10] ss:$8 sps:$4 sm:$0xff]  }
  0x5c   :  { %339 = vmatpush1.bf16.msra.mxu0 %v2283_v2  ;;  %v2287_v5 = vld [vmem:[#allocation5 + $0x24] ss:$8 sps:$4 sm:$0xff]   ;;  %v2289_v6 = vld [vmem:[#allocation5 + $0x20] ss:$8 sps:$4 sm:$0xff]   ;;  %v2290_v7 = vld [vmem:[#allocation5 + $0x34] ss:$8 sps:$4 sm:$0xff]  }
  0x5d   :  { %340 = vmatprep.subr.bf16.mxu0 %v2284_v3  ;;  %v2292_v8 = vld [vmem:[#allocation5 + $0x30] ss:$8 sps:$4 sm:$0xff]   ;;  %v2293_v9 = vld [vmem:[#allocation5 + $0x44] ss:$8 sps:$4 sm:$0xff]   ;;  %v2295_v10 = vld [vmem:[#allocation5 + $0x40] ss:$8 sps:$4 sm:$0xff]  }
  0x5e   :  { %v2296_v11 = vld [vmem:[#allocation5 + $0x54] ss:$8 sps:$4 sm:$0xff]   ;;  %v2298_v12 = vld [vmem:[#allocation5 + $0x50] ss:$8 sps:$4 sm:$0xff]   ;;  %v2299_v13 = vld [vmem:[#allocation5 + $0x64] ss:$8 sps:$4 sm:$0xff]  }
  0x5f   :  { %v2301_v14 = vld [vmem:[#allocation5 + $0x60] ss:$8 sps:$4 sm:$0xff]   ;;  %v2302_v15 = vld [vmem:[#allocation5 + $0x74] ss:$8 sps:$4 sm:$0xff]   ;;  %v2304_v16 = vld [vmem:[#allocation5 + $0x70] ss:$8 sps:$4 sm:$0xff]  }
  0x60   :  { %341 = vmatpush1.bf16.msra.mxu0 %v2286_v4  ;;  %v2321_v17 = vld [vmem:[#allocation7 + $0x4] ss:$8 sps:$4 sm:$0xff]   ;;  %v2323_v18 = vld [vmem:[#allocation7] ss:$8 sps:$4 sm:$0xff]   ;;  %v2324_v19 = vld [vmem:[#allocation7 + $0x14] ss:$8 sps:$4 sm:$0xff]   ;;  %v152_v4 = vlaneseq }
  0x61   :  { %342 = vmatprep.subr.bf16.mxu0 %v2287_v5  ;;  %831 = vmatprep.subr.bf16.mxu1 %v2321_v17  ;;  %v2305_v20 = vld [vmem:[#allocation2] sm:$0xff]   ;;  %v2326_v21 = vld [vmem:[#allocation7 + $0x10] ss:$8 sps:$4 sm:$0xff]   ;;  %v2330_v24 = vld [vmem:[#allocation7 + $0x34] ss:$8 sps:$4 sm:$0xff]  }
  0x62   :  { %832 = vmatpush1.bf16.msra.mxu1 %v2323_v18  ;;  %v2327_v22 = vld [vmem:[#allocation7 + $0x24] ss:$8 sps:$4 sm:$0xff]   ;;  %v2329_v23 = vld [vmem:[#allocation7 + $0x20] ss:$8 sps:$4 sm:$0xff]   ;;  %v2332_v26 = vld [vmem:[#allocation7 + $0x30] ss:$8 sps:$4 sm:$0xff]  }
  0x63   :  { %833 = vmatprep.subr.bf16.mxu1 %v2324_v19  ;;  %v2306_v25 = vld [vmem:[#allocation2 + $0x8] sm:$0xff]   ;;  %v2336_v29 = vld [vmem:[#allocation7 + $0x54] ss:$8 sps:$4 sm:$0xff]   ;;  %v2338_v31 = vld [vmem:[#allocation7 + $0x50] ss:$8 sps:$4 sm:$0xff]  }
  0x64   :  { %343 = vmatpush1.bf16.msra.mxu0 %v2289_v6  ;;  %v2333_v27 = vld [vmem:[#allocation7 + $0x44] ss:$8 sps:$4 sm:$0xff]   ;;  %v2335_v28 = vld [vmem:[#allocation7 + $0x40] ss:$8 sps:$4 sm:$0xff]   ;;  %v2342_v34 = vld [vmem:[#allocation7 + $0x74] ss:$8 sps:$4 sm:$0xff]  }
  0x65   :  { %344 = vmatprep.subr.bf16.mxu0 %v2290_v7  ;;  %v2339_v32 = vld [vmem:[#allocation7 + $0x64] ss:$8 sps:$4 sm:$0xff]   ;;  %v2341_v33 = vld [vmem:[#allocation7 + $0x60] ss:$8 sps:$4 sm:$0xff]   ;;  %v2308_v35 = vld [vmem:[#allocation2 + $0x18] sm:$0xff]   ;;  %v153_v7 = vshrl.u32 %v152_v4, 7 }
  0x66   :  { %834 = vmatpush1.bf16.msra.mxu1 %v2326_v21  ;;  %v2344_v36 = vld [vmem:[#allocation7 + $0x70] ss:$8 sps:$4 sm:$0xff]   ;;  %v2345_v37 = vld [vmem:[#allocation7 + $0x84] ss:$8 sps:$4 sm:$0xff]   ;;  %v2347_v38 = vld [vmem:[#allocation7 + $0x80] ss:$8 sps:$4 sm:$0xff]  }
  0x67   :  { %835 = vmatprep.subr.bf16.mxu1 %v2327_v22  ;;  %v2348_v39 = vld [vmem:[#allocation7 + $0x94] ss:$8 sps:$4 sm:$0xff]   ;;  %v2309_v40 = vld [vmem:[#allocation2 + $0x20] sm:$0xff]   ;;  %v2350_v41 = vld [vmem:[#allocation7 + $0x90] ss:$8 sps:$4 sm:$0xff]  }
  0x68   :  { %345 = vmatpush1.bf16.msra.mxu0 %v2292_v8  ;;  %v2351_v42 = vld [vmem:[#allocation7 + $0xa4] ss:$8 sps:$4 sm:$0xff]   ;;  %v2353_v43 = vld [vmem:[#allocation7 + $0xa0] ss:$8 sps:$4 sm:$0xff]   ;;  %v2354_v44 = vld [vmem:[#allocation7 + $0xb4] ss:$8 sps:$4 sm:$0xff]  }
  0x69   :  { %346 = vmatprep.subr.bf16.mxu0 %v2293_v9  ;;  %v2310_v45 = vld [vmem:[#allocation2 + $0x28] sm:$0xff]   ;;  %v2356_v46 = vld [vmem:[#allocation7 + $0xb0] ss:$8 sps:$4 sm:$0xff]   ;;  %v2360_v49 = vld [vmem:[#allocation7 + $0xd4] ss:$8 sps:$4 sm:$0xff]   ;;  %v2726_v8 = vsub.s32 0, %v153_v7 }
  0x6a   :  { %836 = vmatpush1.bf16.msra.mxu1 %v2329_v23  ;;  %v2357_v47 = vld [vmem:[#allocation7 + $0xc4] ss:$8 sps:$4 sm:$0xff]   ;;  %v2359_v48 = vld [vmem:[#allocation7 + $0xc0] ss:$8 sps:$4 sm:$0xff]   ;;  %v2311_v50 = vld [vmem:[#allocation2 + $0x30] sm:$0xff]  }
  0x6b   :  { %837 = vmatprep.subr.bf16.mxu1 %v2330_v24  ;;  %v2312_v51 = vld [vmem:[#allocation2 + $0x38] sm:$0xff]   ;;  %v2313_v52 = vld [vmem:[#allocation2 + $0x40] sm:$0xff]   ;;  %v2314_v53 = vld [vmem:[#allocation2 + $0x48] sm:$0xff]  }
  0x6c   :  { %347 = vmatpush1.bf16.msra.mxu0 %v2295_v10  ;;  %v2315_v54 = vld [vmem:[#allocation2 + $0x50] sm:$0xff]   ;;  %v2316_v56 = vld [vmem:[#allocation2 + $0x58] sm:$0xff]   ;;  %v2363_v57 = vld [vmem:[#allocation7 + $0xe4] ss:$8 sps:$4 sm:$0xff]  }
  0x6d   :  { %348 = vmatprep.subr.bf16.mxu0 %v2296_v11  ;;  %v2362_v55 = vld [vmem:[#allocation7 + $0xd0] ss:$8 sps:$4 sm:$0xff]   ;;  %v2365_v58 = vld [vmem:[#allocation7 + $0xe0] ss:$8 sps:$4 sm:$0xff]   ;;  %v2366_v59 = vld [vmem:[#allocation7 + $0xf4] ss:$8 sps:$4 sm:$0xff]  }
  0x6e   :  { %838 = vmatpush1.bf16.msra.mxu1 %v2332_v26  ;;  %v2368_v60 = vld [vmem:[#allocation7 + $0xf0] ss:$8 sps:$4 sm:$0xff]   ;;  %v2317_v61 = vld [vmem:[#allocation2 + $0x60] sm:$0xff]   ;;  %v2318_v62 = vld [vmem:[#allocation2 + $0x68] sm:$0xff]  }
  0x6f   :  { %839 = vmatprep.subr.bf16.mxu1 %v2333_v27  ;;  %v2319_v63 = vld [vmem:[#allocation2 + $0x70] sm:$0xff]   ;;  %v2320_v1 = vld [vmem:[#allocation2 + $0x78] sm:$0xff]   ;;  %v2369_v2 = vld [vmem:[#allocation8] ss:$8 sps:$4 sm:$0xff]  }
  0x70   :  { %349 = vmatpush1.bf16.msra.mxu0 %v2298_v12  ;;  %v2371_v3 = vld [vmem:[#allocation8 + $0x4] ss:$8 sps:$4 sm:$0xff]   ;;  %v2372_v5 = vld [vmem:[#allocation8 + $0x10] ss:$8 sps:$4 sm:$0xff]   ;;  %v2374_v6 = vld [vmem:[#allocation8 + $0x14] ss:$8 sps:$4 sm:$0xff]  }
  0x71   :  { %350 = vmatprep.subr.bf16.mxu0 %v2299_v13  ;;  %v150_v9 = vld [vmem:[%s3072_s2] sm:$0x3]  ;;  %v2377_v11 = vld [vmem:[#allocation8 + $0x24] ss:$8 sps:$4 sm:$0xff]   ;;  %v2386_v26 = vld [vmem:[#allocation8 + $0x54] ss:$8 sps:$4 sm:$0xff]  }
  0x72   :  { %840 = vmatpush1.bf16.msra.mxu1 %v2335_v28  ;;  %v2375_v10 = vld [vmem:[#allocation8 + $0x20] ss:$8 sps:$4 sm:$0xff]   ;;  %v2734_v12 = vrot.slane %v150_v9, %v2726_v8  ;;  %v2383_v24 = vld [vmem:[#allocation8 + $0x44] ss:$8 sps:$4 sm:$0xff]  }
  0x73   :  { %841 = vmatprep.subr.bf16.mxu1 %v2336_v29  ;;  %v2381_v23 = vld [vmem:[#allocation8 + $0x40] ss:$8 sps:$4 sm:$0xff]  }
  0x74   :  { %351 = vmatpush1.bf16.msra.mxu0 %v2301_v14 }
  0x75   :  { %352 = vmatprep.subr.bf16.mxu0 %v2302_v15  ;;  %v2378_v15 = vld [vmem:[#allocation8 + $0x30] ss:$8 sps:$4 sm:$0xff]  }
  0x76   :  { %842 = vmatpush1.bf16.msra.mxu1 %v2338_v31 }
  0x77   :  { %843 = vmatprep.subr.bf16.mxu1 %v2339_v32  ;;  %v2384_v32 = vld [vmem:[#allocation8 + $0x50] ss:$8 sps:$4 sm:$0xff]  }
  0x78   :  { %353 = vmatpush1.bf16.msra.mxu0 %v2304_v16  ;;  %v2380_v16 = vld [vmem:[#allocation8 + $0x34] ss:$8 sps:$4 sm:$0xff]  }
  0x79   :  { %1324 = vmatprep.subr.bf16.mxu0 %v2371_v3 }
  0x7a   :  { %844 = vmatpush1.bf16.msra.mxu1 %v2341_v33 }
  0x7b   :  { %371 = vmatmul.mubr.bf16.vlgmr.msra.gmra.mrb[0].mxu0 %v2305_v20  ;;  %845 = vmatprep.subr.bf16.mxu1 %v2342_v34 }
  0x7c   :  { %380 = vmatprep.mubr.bf16.mxu0 %v2582_v0  ;;  %1325 = vmatpush1.bf16.msra.mxu0 %v2369_v2 }
  0x7d   :  { %1326 = vmatprep.subr.bf16.mxu0 %v2374_v6  ;;  %v2396_v6 = vld [vmem:[#allocation8 + $0x90] ss:$8 sps:$4 sm:$0xff]  }
  0x7e   :  { %846 = vmatpush1.bf16.msra.mxu1 %v2344_v36 }
  0x7f   :  { %847 = vmatprep.subr.bf16.mxu1 %v2345_v37 }
  0x80   :  { %1327 = vmatpush1.bf16.msra.mxu0 %v2372_v5 }
  0x81   :  { %1328 = vmatprep.subr.bf16.mxu0 %v2377_v11 }
  0x82   :  { %848 = vmatpush1.bf16.msra.mxu1 %v2347_v38 }
  0x83   :  { %381 = vmatmul.mubr.bf16.gmra.mrb[4].mxu0 %v2306_v25  ;;  %849 = vmatprep.subr.bf16.mxu1 %v2348_v39 }
  0x84   :  { %390 = vmatprep.mubr.bf16.mxu0 %v2582_v0  ;;  %1329 = vmatpush1.bf16.msra.mxu0 %v2375_v10  ;;  %v2401_v10 = vld [vmem:[#allocation8 + $0xa4] ss:$8 sps:$4 sm:$0xff]  }
  0x85   :  { %1330 = vmatprep.subr.bf16.mxu0 %v2380_v16 }
  0x86   :  { %850 = vmatpush1.bf16.msra.mxu1 %v2350_v41 }
  0x87   :  { %851 = vmatprep.subr.bf16.mxu1 %v2351_v42  ;;  %v2387_v42 = vld [vmem:[#allocation8 + $0x60] ss:$8 sps:$4 sm:$0xff]  }
  0x88   :  { %1331 = vmatpush1.bf16.msra.mxu0 %v2378_v15 }
  0x89   :  { %1332 = vmatprep.subr.bf16.mxu0 %v2383_v24 }
  0x8a   :  { %852 = vmatpush1.bf16.msra.mxu1 %v2353_v43 }
  0x8b   :  { %391 = vmatmul.mubr.bf16.gmra.mrb[8].mxu0 %v2307_v30  ;;  %853 = vmatprep.subr.bf16.mxu1 %v2354_v44  ;;  %v2392_v44 = vld [vmem:[#allocation8 + $0x74] ss:$8 sps:$4 sm:$0xff]  }
  0x8c   :  { %400 = vmatprep.mubr.bf16.mxu0 %v2582_v0  ;;  %1333 = vmatpush1.bf16.msra.mxu0 %v2381_v23 }
  0x8d   :  { %1334 = vmatprep.subr.bf16.mxu0 %v2386_v26 }
  0x8e   :  { %854 = vmatpush1.bf16.msra.mxu1 %v2356_v46 }
  0x8f   :  { %855 = vmatprep.subr.bf16.mxu1 %v2357_v47 }
  0x90   :  { %1335 = vmatpush1.bf16.msra.mxu0 %v2384_v32 }
  0x92   :  { %856 = vmatpush1.bf16.msra.mxu1 %v2359_v48 }
  0x93   :  { %401 = vmatmul.mubr.bf16.gmra.mrb[12].mxu0 %v2308_v35  ;;  %857 = vmatprep.subr.bf16.mxu1 %v2360_v49  ;;  %v2389_v35 = vld [vmem:[#allocation8 + $0x64] ss:$8 sps:$4 sm:$0xff]  }
  0x94   :  { %410 = vmatprep.mubr.bf16.mxu0 %v2582_v0  ;;  %1336 = vmatprep.subr.bf16.mxu0 %v2389_v35 }
  0x95   :  { %1337 = vmatpush1.bf16.msra.mxu0 %v2387_v42 }
  0x96   :  { %858 = vmatpush1.bf16.msra.mxu1 %v2362_v55  ;;  %1338 = vmatprep.subr.bf16.mxu0 %v2392_v44 }
  0x97   :  { %859 = vmatprep.subr.bf16.mxu1 %v2363_v57 }
  0x9a   :  { %860 = vmatpush1.bf16.msra.mxu1 %v2365_v58 }
  0x9b   :  { %411 = vmatmul.mubr.bf16.gmra.mrb[16].mxu0 %v2309_v40  ;;  %861 = vmatprep.subr.bf16.mxu1 %v2366_v59 }
  0x9c   :  { %420 = vmatprep.mubr.bf16.mxu0 %v2582_v0 }
  0x9e   :  { %862 = vmatpush1.bf16.msra.mxu1 %v2368_v60  ;;  %v2393_v60 = vld [vmem:[#allocation8 + $0x80] ss:$8 sps:$4 sm:$0xff]  }
  0xa3   :  { %421 = vmatmul.mubr.bf16.gmra.mrb[20].mxu0 %v2310_v45 }
  0xa4   :  { %430 = vmatprep.mubr.bf16.mxu0 %v2582_v0 }
  0xab   :  { %431 = vmatmul.mubr.bf16.gmra.mrb[24].mxu0 %v2311_v50  ;;  %v2390_v50 = vld [vmem:[#allocation8 + $0x70] ss:$8 sps:$4 sm:$0xff]  }
  0xac   :  { %440 = vmatprep.mubr.bf16.mxu0 %v2582_v0  ;;  %1339 = vmatpush1.bf16.msra.mxu0 %v2390_v50 }
  0xb3   :  { %441 = vmatmul.mubr.bf16.gmra.mrb[28].mxu0 %v2312_v51 }
  0xb4   :  { %450 = vmatprep.mubr.bf16.mxu0 %v2582_v0 }
  0xbb   :  { %451 = vmatmul.mubr.bf16.gmra.mrb[32].mxu0 %v2313_v52 }
  0xbc   :  { %460 = vmatprep.mubr.bf16.mxu0 %v2582_v0 }
  0xc3   :  { %461 = vmatmul.mubr.bf16.gmra.mrb[36].mxu0 %v2314_v53  ;;  %v2395_v53 = vld [vmem:[#allocation8 + $0x84] ss:$8 sps:$4 sm:$0xff]  }
  0xc4   :  { %470 = vmatprep.mubr.bf16.mxu0 %v2582_v0  ;;  %1340 = vmatprep.subr.bf16.mxu0 %v2395_v53 }
  0xc5   :  { %1341 = vmatpush1.bf16.msra.mxu0 %v2393_v60 }
  0xcb   :  { %471 = vmatmul.mubr.bf16.gmra.mrb[40].mxu0 %v2315_v54 }
  0xcc   :  { %480 = vmatprep.mubr.bf16.mxu0 %v2582_v0 }
  0xd3   :  { %481 = vmatmul.mubr.bf16.gmra.mrb[44].mxu0 %v2316_v56 }
  0xd4   :  { %490 = vmatprep.mubr.bf16.mxu0 %v2582_v0 }
  0xdb   :  { %491 = vmatmul.mubr.bf16.gmra.mrb[48].mxu0 %v2317_v61 }
  0xdc   :  { %500 = vmatprep.mubr.bf16.mxu0 %v2582_v0 }
  0xe3   :  { %501 = vmatmul.mubr.bf16.gmra.mrb[52].mxu0 %v2318_v62  ;;  %v2398_v62 = vld [vmem:[#allocation8 + $0x94] ss:$8 sps:$4 sm:$0xff]  }
  0xe4   :  { %510 = vmatprep.mubr.bf16.mxu0 %v2582_v0  ;;  %1342 = vmatprep.subr.bf16.mxu0 %v2398_v62 }
  0xe5   :  { %1343 = vmatpush1.bf16.msra.mxu0 %v2396_v6 }
  0xe6   :  { %1344 = vmatprep.subr.bf16.mxu0 %v2401_v10 }
  0xeb   :  { %511 = vmatmul.mubr.bf16.gmra.mrb[56].mxu0 %v2319_v63 }
  0xec   :  { %520 = vmatprep.mubr.bf16.mxu0 %v2582_v0  ;;  %v2731_v0 = vsub.s32 1, %v153_v7 }
  0xee   :  { %v2737_v13 = vrot.slane %v150_v9, %v2731_v0 }
  0xf3   :  { %521 = vmatmul.mubr.bf16.gmra.mrb[60].mxu0 %v2320_v1 }
 0x14e   :  { %v372_v14 = vpop.f32.mrb[0].mxu0 }
 0x14f   :  { %v373_v17 = vadd.f32 %v372_v14, %v2734_v12  ;;  %v374_v18 = vpop.f32.mrb[1].mxu0 }
 0x150   :  { %v375_v19 = vadd.f32 %v374_v18, %v2737_v13  ;;  %v376_v20 = vpop.f32.mrb[2].mxu0 }
 0x151   :  { %v377_v21 = vadd.f32 %v376_v20, %v2734_v12  ;;  %v378_v22 = vpop.f32.mrb[3].mxu0  ;;  %v531_v27 = vmax.f32 %v373_v17, 0.0 }
 0x152   :  { %v379_v25 = vadd.f32 %v378_v22, %v2737_v13  ;;  %v532_v29 = vmax.f32 %v375_v19, 0.0  ;;  %v2399_v19 = vld [vmem:[#allocation8 + $0xa0] ss:$8 sps:$4 sm:$0xff]  }
 0x153   :  { %v533_v28 = vmax.f32 %v377_v21, 0.0  ;;  %v2404_v21 = vld [vmem:[#allocation8 + $0xb4] ss:$8 sps:$4 sm:$0xff]   ;;  %1345 = vmatpush1.bf16.msra.mxu0 %v2399_v19 }
 0x154   :  { %v534_v30 = vmax.f32 %v379_v25, 0.0  ;;  %1346 = vmatprep.subr.bf16.mxu0 %v2404_v21 }
 0x155   :  { %v595_v31 = vpack.c.bf16 %v533_v28, %v531_v27  ;;  %v2402_v27 = vld [vmem:[#allocation8 + $0xb0] ss:$8 sps:$4 sm:$0xff]  }
 0x156   :  { %v382_v33 = vpop.f32.mrb[4].mxu0  ;;  %v596_v34 = vpack.c.bf16 %v534_v30, %v532_v29  ;;  %v2407_v30 = vld [vmem:[#allocation8 + $0xc4] ss:$8 sps:$4 sm:$0xff]  }
 0x157   :  { %v383_v36 = vadd.f32 %v382_v33, %v2734_v12  ;;  %v384_v37 = vpop.f32.mrb[5].mxu0  ;;  %1347 = vmatpush1.bf16.msra.mxu0 %v2402_v27 }
 0x158   :  { %v385_v38 = vadd.f32 %v384_v37, %v2737_v13  ;;  %v386_v39 = vpop.f32.mrb[6].mxu0  ;;  %863 = vmatprep.mubr.bf16.mxu1 %v596_v34  ;;  %v2405_v37 = vld [vmem:[#allocation8 + $0xc0] ss:$8 sps:$4 sm:$0xff]   ;;  %1348 = vmatprep.subr.bf16.mxu0 %v2407_v30 }
 0x159   :  { %v387_v40 = vadd.f32 %v386_v39, %v2734_v12  ;;  %v388_v41 = vpop.f32.mrb[7].mxu0  ;;  %864 = vmatmul.mubr.bf16.vlgmr.msra.gmra.mrb[0].mxu1 %v595_v31  ;;  %v535_v45 = vmax.f32 %v383_v36, 0.0  ;;  %v2410_v39 = vld [vmem:[#allocation8 + $0xd4] ss:$8 sps:$4 sm:$0xff]  }
 0x15a   :  { %v389_v43 = vadd.f32 %v388_v41, %v2737_v13  ;;  %v536_v47 = vmax.f32 %v385_v38, 0.0 }
 0x15b   :  { %v537_v46 = vmax.f32 %v387_v40, 0.0  ;;  %1349 = vmatpush1.bf16.msra.mxu0 %v2405_v37 }
 0x15c   :  { %v538_v48 = vmax.f32 %v389_v43, 0.0  ;;  %1350 = vmatprep.subr.bf16.mxu0 %v2410_v39 }
 0x15d   :  { %v597_v49 = vpack.c.bf16 %v537_v46, %v535_v45  ;;  %v2408_v45 = vld [vmem:[#allocation8 + $0xd0] ss:$8 sps:$4 sm:$0xff]  }
 0x15e   :  { %v598_v51 = vpack.c.bf16 %v538_v48, %v536_v47  ;;  %v392_v52 = vpop.f32.mrb[8].mxu0  ;;  %v2413_v48 = vld [vmem:[#allocation8 + $0xe4] ss:$8 sps:$4 sm:$0xff]  }
 0x15f   :  { %v393_v54 = vadd.f32 %v392_v52, %v2734_v12  ;;  %v394_v55 = vpop.f32.mrb[9].mxu0  ;;  %1351 = vmatpush1.bf16.msra.mxu0 %v2408_v45 }
 0x160   :  { %v395_v56 = vadd.f32 %v394_v55, %v2737_v13  ;;  %v396_v57 = vpop.f32.mrb[10].mxu0  ;;  %873 = vmatprep.mubr.bf16.mxu1 %v598_v51  ;;  %v2411_v55 = vld [vmem:[#allocation8 + $0xe0] ss:$8 sps:$4 sm:$0xff]   ;;  %1352 = vmatprep.subr.bf16.mxu0 %v2413_v48 }
 0x161   :  { %v397_v58 = vadd.f32 %v396_v57, %v2734_v12  ;;  %v398_v59 = vpop.f32.mrb[11].mxu0  ;;  %874 = vmatmul.mubr.bf16.gmra.mrb[4].mxu1 %v597_v49  ;;  %v539_v63 = vmax.f32 %v393_v54, 0.0 }
 0x162   :  { %v399_v61 = vadd.f32 %v398_v59, %v2737_v13  ;;  %v540_v2 = vmax.f32 %v395_v56, 0.0 }
 0x163   :  { %v541_v1 = vmax.f32 %v397_v58, 0.0  ;;  %1353 = vmatpush1.bf16.msra.mxu0 %v2411_v55 }
 0x164   :  { %v542_v3 = vmax.f32 %v399_v61, 0.0 }
 0x165   :  { %v599_v5 = vpack.c.bf16 %v541_v1, %v539_v63 }
 0x166   :  { %v600_v7 = vpack.c.bf16 %v542_v3, %v540_v2  ;;  %v402_v9 = vpop.f32.mrb[12].mxu0 }
 0x167   :  { %v403_v11 = vadd.f32 %v402_v9, %v2734_v12  ;;  %v404_v14 = vpop.f32.mrb[13].mxu0 }
 0x168   :  { %v405_v15 = vadd.f32 %v404_v14, %v2737_v13  ;;  %v406_v16 = vpop.f32.mrb[14].mxu0  ;;  %883 = vmatprep.mubr.bf16.mxu1 %v600_v7 }
 0x169   :  { %v407_v17 = vadd.f32 %v406_v16, %v2734_v12  ;;  %v408_v18 = vpop.f32.mrb[15].mxu0  ;;  %884 = vmatmul.mubr.bf16.gmra.mrb[8].mxu1 %v599_v5  ;;  %v543_v22 = vmax.f32 %v403_v11, 0.0 }
 0x16a   :  { %v409_v20 = vadd.f32 %v408_v18, %v2737_v13  ;;  %v544_v24 = vmax.f32 %v405_v15, 0.0 }
 0x16b   :  { %v545_v23 = vmax.f32 %v407_v17, 0.0 }
 0x16c   :  { %v546_v25 = vmax.f32 %v409_v20, 0.0 }
 0x16d   :  { %v601_v26 = vpack.c.bf16 %v545_v23, %v543_v22 }
 0x16e   :  { %v602_v28 = vpack.c.bf16 %v546_v25, %v544_v24  ;;  %v412_v29 = vpop.f32.mrb[16].mxu0 }
 0x16f   :  { %v413_v31 = vadd.f32 %v412_v29, %v2734_v12  ;;  %v414_v32 = vpop.f32.mrb[17].mxu0 }
 0x170   :  { %v415_v33 = vadd.f32 %v414_v32, %v2737_v13  ;;  %v416_v34 = vpop.f32.mrb[18].mxu0  ;;  %893 = vmatprep.mubr.bf16.mxu1 %v602_v28 }
 0x171   :  { %v417_v35 = vadd.f32 %v416_v34, %v2734_v12  ;;  %v418_v36 = vpop.f32.mrb[19].mxu0  ;;  %894 = vmatmul.mubr.bf16.gmra.mrb[12].mxu1 %v601_v26  ;;  %v547_v40 = vmax.f32 %v413_v31, 0.0 }
 0x172   :  { %v419_v38 = vadd.f32 %v418_v36, %v2737_v13  ;;  %v548_v42 = vmax.f32 %v415_v33, 0.0 }
 0x173   :  { %v549_v41 = vmax.f32 %v417_v35, 0.0 }
 0x174   :  { %v550_v43 = vmax.f32 %v419_v38, 0.0 }
 0x175   :  { %v603_v44 = vpack.c.bf16 %v549_v41, %v547_v40 }
 0x176   :  { %v604_v46 = vpack.c.bf16 %v550_v43, %v548_v42  ;;  %v422_v47 = vpop.f32.mrb[20].mxu0 }
 0x177   :  { %v423_v49 = vadd.f32 %v422_v47, %v2734_v12  ;;  %v424_v50 = vpop.f32.mrb[21].mxu0 }
 0x178   :  { %v425_v51 = vadd.f32 %v424_v50, %v2737_v13  ;;  %v426_v52 = vpop.f32.mrb[22].mxu0  ;;  %903 = vmatprep.mubr.bf16.mxu1 %v604_v46 }
 0x179   :  { %v427_v53 = vadd.f32 %v426_v52, %v2734_v12  ;;  %v428_v54 = vpop.f32.mrb[23].mxu0  ;;  %904 = vmatmul.mubr.bf16.gmra.mrb[16].mxu1 %v603_v44  ;;  %v551_v57 = vmax.f32 %v423_v49, 0.0 }
 0x17a   :  { %v429_v56 = vadd.f32 %v428_v54, %v2737_v13  ;;  %v552_v59 = vmax.f32 %v425_v51, 0.0 }
 0x17b   :  { %v553_v58 = vmax.f32 %v427_v53, 0.0 }
 0x17c   :  { %v554_v60 = vmax.f32 %v429_v56, 0.0 }
 0x17d   :  { %v605_v61 = vpack.c.bf16 %v553_v58, %v551_v57 }
 0x17e   :  { %v606_v62 = vpack.c.bf16 %v554_v60, %v552_v59  ;;  %v432_v63 = vpop.f32.mrb[24].mxu0 }
 0x17f   :  { %v433_v1 = vadd.f32 %v432_v63, %v2734_v12  ;;  %v434_v2 = vpop.f32.mrb[25].mxu0 }
 0x180   :  { %v435_v3 = vadd.f32 %v434_v2, %v2737_v13  ;;  %v436_v5 = vpop.f32.mrb[26].mxu0  ;;  %913 = vmatprep.mubr.bf16.mxu1 %v606_v62 }
 0x181   :  { %v437_v6 = vadd.f32 %v436_v5, %v2734_v12  ;;  %v438_v7 = vpop.f32.mrb[27].mxu0  ;;  %914 = vmatmul.mubr.bf16.gmra.mrb[20].mxu1 %v605_v61  ;;  %v555_v10 = vmax.f32 %v433_v1, 0.0 }
 0x182   :  { %v439_v9 = vadd.f32 %v438_v7, %v2737_v13  ;;  %v556_v14 = vmax.f32 %v435_v3, 0.0 }
 0x183   :  { %v557_v11 = vmax.f32 %v437_v6, 0.0 }
 0x184   :  { %v558_v15 = vmax.f32 %v439_v9, 0.0 }
 0x185   :  { %v607_v16 = vpack.c.bf16 %v557_v11, %v555_v10 }
 0x186   :  { %v608_v17 = vpack.c.bf16 %v558_v15, %v556_v14  ;;  %v442_v18 = vpop.f32.mrb[28].mxu0 }
 0x187   :  { %v443_v19 = vadd.f32 %v442_v18, %v2734_v12  ;;  %v444_v20 = vpop.f32.mrb[29].mxu0 }
 0x188   :  { %v445_v21 = vadd.f32 %v444_v20, %v2737_v13  ;;  %v446_v22 = vpop.f32.mrb[30].mxu0  ;;  %923 = vmatprep.mubr.bf16.mxu1 %v608_v17 }
 0x189   :  { %v447_v23 = vadd.f32 %v446_v22, %v2734_v12  ;;  %v448_v24 = vpop.f32.mrb[31].mxu0  ;;  %924 = vmatmul.mubr.bf16.gmra.mrb[24].mxu1 %v607_v16  ;;  %v559_v26 = vmax.f32 %v443_v19, 0.0 }
 0x18a   :  { %v449_v25 = vadd.f32 %v448_v24, %v2737_v13  ;;  %v560_v28 = vmax.f32 %v445_v21, 0.0 }
 0x18b   :  { %v561_v27 = vmax.f32 %v447_v23, 0.0 }
 0x18c   :  { %v562_v29 = vmax.f32 %v449_v25, 0.0 }
 0x18d   :  { %v609_v30 = vpack.c.bf16 %v561_v27, %v559_v26 }
 0x18e   :  { %v610_v31 = vpack.c.bf16 %v562_v29, %v560_v28  ;;  %v452_v32 = vpop.f32.mrb[32].mxu0 }
 0x18f   :  { %v453_v33 = vadd.f32 %v452_v32, %v2734_v12  ;;  %v454_v34 = vpop.f32.mrb[33].mxu0 }
 0x190   :  { %v455_v35 = vadd.f32 %v454_v34, %v2737_v13  ;;  %v456_v36 = vpop.f32.mrb[34].mxu0  ;;  %933 = vmatprep.mubr.bf16.mxu1 %v610_v31 }
 0x191   :  { %v457_v37 = vadd.f32 %v456_v36, %v2734_v12  ;;  %v458_v38 = vpop.f32.mrb[35].mxu0  ;;  %934 = vmatmul.mubr.bf16.gmra.mrb[28].mxu1 %v609_v30  ;;  %v563_v40 = vmax.f32 %v453_v33, 0.0  ;;  %v2416_v36 = vld [vmem:[#allocation8 + $0xf4] ss:$8 sps:$4 sm:$0xff]  }
 0x192   :  { %v459_v39 = vadd.f32 %v458_v38, %v2737_v13  ;;  %v564_v42 = vmax.f32 %v455_v35, 0.0  ;;  %v2414_v38 = vld [vmem:[#allocation8 + $0xf0] ss:$8 sps:$4 sm:$0xff]   ;;  %1354 = vmatprep.subr.bf16.mxu0 %v2416_v36 }
 0x193   :  { %v565_v41 = vmax.f32 %v457_v37, 0.0  ;;  %1355 = vmatpush1.bf16.msra.mxu0 %v2414_v38  ;;  %v2419_v38 = vld [vmem:[#allocation10 + $0x48] sm:$0xff]  }
 0x194   :  { %v566_v43 = vmax.f32 %v459_v39, 0.0 }
 0x195   :  { %v611_v44 = vpack.c.bf16 %v565_v41, %v563_v40 }
 0x196   :  { %v612_v45 = vpack.c.bf16 %v566_v43, %v564_v42  ;;  %v462_v46 = vpop.f32.mrb[36].mxu0 }
 0x197   :  { %v463_v47 = vadd.f32 %v462_v46, %v2734_v12  ;;  %v464_v48 = vpop.f32.mrb[37].mxu0 }
 0x198   :  { %v465_v49 = vadd.f32 %v464_v48, %v2737_v13  ;;  %v466_v50 = vpop.f32.mrb[38].mxu0  ;;  %943 = vmatprep.mubr.bf16.mxu1 %v612_v45 }
 0x199   :  { %v467_v51 = vadd.f32 %v466_v50, %v2734_v12  ;;  %v468_v52 = vpop.f32.mrb[39].mxu0  ;;  %944 = vmatmul.mubr.bf16.gmra.mrb[32].mxu1 %v611_v44  ;;  %v567_v54 = vmax.f32 %v463_v47, 0.0 }
 0x19a   :  { %v469_v53 = vadd.f32 %v468_v52, %v2737_v13  ;;  %v568_v56 = vmax.f32 %v465_v49, 0.0 }
 0x19b   :  { %v569_v55 = vmax.f32 %v467_v51, 0.0 }
 0x19c   :  { %v570_v57 = vmax.f32 %v469_v53, 0.0 }
 0x19d   :  { %v613_v58 = vpack.c.bf16 %v569_v55, %v567_v54 }
 0x19e   :  { %v614_v59 = vpack.c.bf16 %v570_v57, %v568_v56  ;;  %v472_v60 = vpop.f32.mrb[40].mxu0 }
 0x19f   :  { %v473_v61 = vadd.f32 %v472_v60, %v2734_v12  ;;  %v474_v62 = vpop.f32.mrb[41].mxu0 }
 0x1a0   :  { %v475_v63 = vadd.f32 %v474_v62, %v2737_v13  ;;  %v476_v1 = vpop.f32.mrb[42].mxu0  ;;  %953 = vmatprep.mubr.bf16.mxu1 %v614_v59 }
 0x1a1   :  { %v477_v2 = vadd.f32 %v476_v1, %v2734_v12  ;;  %v478_v3 = vpop.f32.mrb[43].mxu0  ;;  %954 = vmatmul.mubr.bf16.gmra.mrb[36].mxu1 %v613_v58  ;;  %v571_v6 = vmax.f32 %v473_v61, 0.0 }
 0x1a2   :  { %v479_v5 = vadd.f32 %v478_v3, %v2737_v13  ;;  %v572_v9 = vmax.f32 %v475_v63, 0.0 }
 0x1a3   :  { %v573_v7 = vmax.f32 %v477_v2, 0.0 }
 0x1a4   :  { %v574_v10 = vmax.f32 %v479_v5, 0.0 }
 0x1a5   :  { %v615_v11 = vpack.c.bf16 %v573_v7, %v571_v6 }
 0x1a6   :  { %v616_v14 = vpack.c.bf16 %v574_v10, %v572_v9  ;;  %v482_v15 = vpop.f32.mrb[44].mxu0 }
 0x1a7   :  { %v483_v16 = vadd.f32 %v482_v15, %v2734_v12  ;;  %v484_v17 = vpop.f32.mrb[45].mxu0 }
 0x1a8   :  { %v485_v18 = vadd.f32 %v484_v17, %v2737_v13  ;;  %v486_v19 = vpop.f32.mrb[46].mxu0  ;;  %963 = vmatprep.mubr.bf16.mxu1 %v616_v14 }
 0x1a9   :  { %v487_v20 = vadd.f32 %v486_v19, %v2734_v12  ;;  %v488_v21 = vpop.f32.mrb[47].mxu0  ;;  %964 = vmatmul.mubr.bf16.gmra.mrb[40].mxu1 %v615_v11  ;;  %v575_v23 = vmax.f32 %v483_v16, 0.0 }
 0x1aa   :  { %v489_v22 = vadd.f32 %v488_v21, %v2737_v13  ;;  %v576_v25 = vmax.f32 %v485_v18, 0.0 }
 0x1ab   :  { %v577_v24 = vmax.f32 %v487_v20, 0.0 }
 0x1ac   :  { %v578_v26 = vmax.f32 %v489_v22, 0.0 }
 0x1ad   :  { %v617_v27 = vpack.c.bf16 %v577_v24, %v575_v23 }
 0x1ae   :  { %v618_v28 = vpack.c.bf16 %v578_v26, %v576_v25  ;;  %v492_v29 = vpop.f32.mrb[48].mxu0 }
 0x1af   :  { %v493_v30 = vadd.f32 %v492_v29, %v2734_v12  ;;  %v494_v31 = vpop.f32.mrb[49].mxu0  ;;  %v2417_v29 = vld [vmem:[#allocation10 + $0x40] sm:$0xff]  }
 0x1b0   :  { %v495_v32 = vadd.f32 %v494_v31, %v2737_v13  ;;  %v496_v33 = vpop.f32.mrb[50].mxu0  ;;  %973 = vmatprep.mubr.bf16.mxu1 %v618_v28  ;;  %v659_v28 = vld [vmem:[%s3074_s4] sm:$0x3]  ;;  %2254 = vmatprep.subr.bf16.mxu1 %v2417_v29 }
 0x1b1   :  { %v497_v34 = vadd.f32 %v496_v33, %v2734_v12  ;;  %v498_v35 = vpop.f32.mrb[51].mxu0  ;;  %974 = vmatmul.mubr.bf16.gmra.mrb[44].mxu1 %v617_v27  ;;  %v579_v39 = vmax.f32 %v493_v30, 0.0  ;;  %v2418_v30 = vld [vmem:[#allocation10] sm:$0xff]   ;;  %2142 = vmatprep.subr.bf16.mxu0 %v2417_v29 }
 0x1b2   :  { %v499_v37 = vadd.f32 %v498_v35, %v2737_v13  ;;  %v580_v41 = vmax.f32 %v495_v32, 0.0  ;;  %2262 = vmatpush3.bf16.msra.mxu1 %v2418_v30 }
 0x1b3   :  { %v581_v40 = vmax.f32 %v497_v34, 0.0  ;;  %2255 = vmatprep.subr.bf16.mxu1 %v2419_v38 }
 0x1b4   :  { %v582_v42 = vmax.f32 %v499_v37, 0.0 }
 0x1b5   :  { %v619_v43 = vpack.c.bf16 %v581_v40, %v579_v39  ;;  %v2420_v40 = vld [vmem:[#allocation10 + $0x8] sm:$0xff]  }
 0x1b6   :  { %v620_v44 = vpack.c.bf16 %v582_v42, %v580_v41  ;;  %v502_v45 = vpop.f32.mrb[52].mxu0  ;;  %2263 = vmatpush3.bf16.msra.mxu1 %v2420_v40 }
 0x1b7   :  { %v503_v46 = vadd.f32 %v502_v45, %v2734_v12  ;;  %v504_v47 = vpop.f32.mrb[53].mxu0 }
 0x1b8   :  { %v505_v48 = vadd.f32 %v504_v47, %v2737_v13  ;;  %v506_v49 = vpop.f32.mrb[54].mxu0  ;;  %983 = vmatprep.mubr.bf16.mxu1 %v620_v44 }
 0x1b9   :  { %v507_v50 = vadd.f32 %v506_v49, %v2734_v12  ;;  %v508_v51 = vpop.f32.mrb[55].mxu0  ;;  %984 = vmatmul.mubr.bf16.gmra.mrb[48].mxu1 %v619_v43  ;;  %v583_v53 = vmax.f32 %v503_v46, 0.0  ;;  %v2421_v43 = vld [vmem:[#allocation10 + $0x50] sm:$0xff]  }
 0x1ba   :  { %v509_v52 = vadd.f32 %v508_v51, %v2737_v13  ;;  %v584_v55 = vmax.f32 %v505_v48, 0.0  ;;  %2256 = vmatprep.subr.bf16.mxu1 %v2421_v43  ;;  %v2422_v49 = vld [vmem:[#allocation10 + $0x10] sm:$0xff]  }
 0x1bb   :  { %v585_v54 = vmax.f32 %v507_v50, 0.0  ;;  %2264 = vmatpush3.bf16.msra.mxu1 %v2422_v49 }
 0x1bc   :  { %v586_v56 = vmax.f32 %v509_v52, 0.0  ;;  %v2423_v52 = vld [vmem:[#allocation10 + $0x58] sm:$0xff]  }
 0x1bd   :  { %v621_v57 = vpack.c.bf16 %v585_v54, %v583_v53  ;;  %2257 = vmatprep.subr.bf16.mxu1 %v2423_v52 }
 0x1be   :  { %v622_v58 = vpack.c.bf16 %v586_v56, %v584_v55  ;;  %v512_v59 = vpop.f32.mrb[56].mxu0 }
 0x1bf   :  { %v513_v60 = vadd.f32 %v512_v59, %v2734_v12  ;;  %v514_v61 = vpop.f32.mrb[57].mxu0 }
 0x1c0   :  { %v515_v62 = vadd.f32 %v514_v61, %v2737_v13  ;;  %v516_v63 = vpop.f32.mrb[58].mxu0  ;;  %993 = vmatprep.mubr.bf16.mxu1 %v622_v58  ;;  %v2424_v58 = vld [vmem:[#allocation10 + $0x18] sm:$0xff]   ;;  %v2425_v61 = vld [vmem:[#allocation10 + $0x60] sm:$0xff]  }
 0x1c1   :  { %v517_v1 = vadd.f32 %v516_v63, %v2734_v12  ;;  %v518_v2 = vpop.f32.mrb[59].mxu0  ;;  %994 = vmatmul.mubr.bf16.gmra.mrb[52].mxu1 %v621_v57  ;;  %v587_v5 = vmax.f32 %v513_v60, 0.0 }
 0x1c2   :  { %v519_v3 = vadd.f32 %v518_v2, %v2737_v13  ;;  %v588_v7 = vmax.f32 %v515_v62, 0.0  ;;  %2265 = vmatpush3.bf16.msra.mxu1 %v2424_v58 }
 0x1c3   :  { %v589_v6 = vmax.f32 %v517_v1, 0.0  ;;  %2258 = vmatprep.subr.bf16.mxu1 %v2425_v61 }
 0x1c4   :  { %v590_v9 = vmax.f32 %v519_v3, 0.0 }
 0x1c5   :  { %v623_v10 = vpack.c.bf16 %v589_v6, %v587_v5  ;;  %v2426_v5 = vld [vmem:[#allocation10 + $0x20] sm:$0xff]  }
 0x1c6   :  { %v624_v11 = vpack.c.bf16 %v590_v9, %v588_v7  ;;  %v522_v14 = vpop.f32.mrb[60].mxu0  ;;  %v2427_v9 = vld [vmem:[#allocation10 + $0x68] sm:$0xff]   ;;  %2266 = vmatpush3.bf16.msra.mxu1 %v2426_v5 }
 0x1c7   :  { %v523_v15 = vadd.f32 %v522_v14, %v2734_v12  ;;  %v524_v16 = vpop.f32.mrb[61].mxu0  ;;  %2259 = vmatprep.subr.bf16.mxu1 %v2427_v9 }
 0x1c8   :  { %v525_v17 = vadd.f32 %v524_v16, %v2737_v13  ;;  %v526_v18 = vpop.f32.mrb[62].mxu0  ;;  %1003 = vmatprep.mubr.bf16.mxu1 %v624_v11 }
 0x1c9   :  { %v527_v19 = vadd.f32 %v526_v18, %v2734_v12  ;;  %v528_v20 = vpop.f32.mrb[63].mxu0  ;;  %1004 = vmatmul.mubr.bf16.gmra.mrb[56].mxu1 %v623_v10  ;;  %v591_v22 = vmax.f32 %v523_v15, 0.0  ;;  %v2807_v12 = vrot.slane %v659_v28, %v2726_v8 }
 0x1ca   :  { %v529_v21 = vadd.f32 %v528_v20, %v2737_v13  ;;  %v592_v24 = vmax.f32 %v525_v17, 0.0  ;;  %v2810_v13 = vrot.slane %v659_v28, %v2731_v0  ;;  %v2428_v17 = vld [vmem:[#allocation10 + $0x28] sm:$0xff]   ;;  %v2429_v20 = vld [vmem:[#allocation10 + $0x70] sm:$0xff]  }
 0x1cb   :  { %v593_v23 = vmax.f32 %v527_v19, 0.0  ;;  %2267 = vmatpush3.bf16.msra.mxu1 %v2428_v17 }
 0x1cc   :  { %v594_v25 = vmax.f32 %v529_v21, 0.0  ;;  %2260 = vmatprep.subr.bf16.mxu1 %v2429_v20 }
 0x1cd   :  { %v625_v26 = vpack.c.bf16 %v593_v23, %v591_v22 }
 0x1ce   :  { %v626_v27 = vpack.c.bf16 %v594_v25, %v592_v24 }
 0x1d0   :  { %1013 = vmatprep.mubr.bf16.mxu1 %v626_v27 }
 0x1d1   :  { %1014 = vmatmul.mubr.bf16.gmra.mrb[60].mxu1 %v625_v26  ;;  %v2430_v26 = vld [vmem:[#allocation10 + $0x30] sm:$0xff]  }
 0x1d2   :  { %2268 = vmatpush3.bf16.msra.mxu1 %v2430_v26 }
 0x22c   :  { %v865_v31 = vpop.f32.mrb[0].mxu1 }
 0x22d   :  { %v866_v32 = vadd.f32 %v865_v31, %v2807_v12  ;;  %v867_v33 = vpop.f32.mrb[1].mxu1 }
 0x22e   :  { %v868_v34 = vadd.f32 %v867_v33, %v2810_v13  ;;  %v869_v35 = vpop.f32.mrb[2].mxu1 }
 0x22f   :  { %v870_v36 = vadd.f32 %v869_v35, %v2807_v12  ;;  %v871_v37 = vpop.f32.mrb[3].mxu1  ;;  %v1024_v41 = vmax.f32 %v866_v32, 0.0 }
 0x230   :  { %v872_v39 = vadd.f32 %v871_v37, %v2810_v13  ;;  %v1025_v44 = vmax.f32 %v868_v34, 0.0 }
 0x231   :  { %v1026_v42 = vmax.f32 %v870_v36, 0.0 }
 0x232   :  { %v1027_v45 = vmax.f32 %v872_v39, 0.0 }
 0x233   :  { %v1088_v46 = vpack.c.bf16 %v1026_v42, %v1024_v41 }
 0x234   :  { %v1089_v47 = vpack.c.bf16 %v1027_v45, %v1025_v44  ;;  %v875_v48 = vpop.f32.mrb[4].mxu1 }
 0x235   :  { %v876_v50 = vadd.f32 %v875_v48, %v2807_v12  ;;  %v877_v51 = vpop.f32.mrb[5].mxu1 }
 0x236   :  { %v878_v53 = vadd.f32 %v877_v51, %v2810_v13  ;;  %v879_v54 = vpop.f32.mrb[6].mxu1  ;;  %1356 = vmatprep.mubr.bf16.mxu0 %v1089_v47 }
 0x237   :  { %v880_v55 = vadd.f32 %v879_v54, %v2807_v12  ;;  %v881_v56 = vpop.f32.mrb[7].mxu1  ;;  %1357 = vmatmul.mubr.bf16.vlgmr.msra.gmra.mrb[64].mxu0 %v1088_v46  ;;  %v1028_v59 = vmax.f32 %v876_v50, 0.0 }
 0x238   :  { %v882_v57 = vadd.f32 %v881_v56, %v2810_v13  ;;  %2143 = vmatpush3.bf16.msra.mxu0 %v2418_v30  ;;  %v1029_v62 = vmax.f32 %v878_v53, 0.0 }
 0x239   :  { %v1030_v60 = vmax.f32 %v880_v55, 0.0  ;;  %2144 = vmatprep.subr.bf16.mxu0 %v2419_v38 }
 0x23a   :  { %v1031_v63 = vmax.f32 %v882_v57, 0.0 }
 0x23b   :  { %v1090_v1 = vpack.c.bf16 %v1030_v60, %v1028_v59 }
 0x23c   :  { %v1091_v2 = vpack.c.bf16 %v1031_v63, %v1029_v62  ;;  %v885_v3 = vpop.f32.mrb[8].mxu1  ;;  %2145 = vmatpush3.bf16.msra.mxu0 %v2420_v40 }
 0x23d   :  { %v886_v6 = vadd.f32 %v885_v3, %v2807_v12  ;;  %v887_v7 = vpop.f32.mrb[9].mxu1  ;;  %2146 = vmatprep.subr.bf16.mxu0 %v2421_v43 }
 0x23e   :  { %v888_v10 = vadd.f32 %v887_v7, %v2810_v13  ;;  %v889_v11 = vpop.f32.mrb[10].mxu1  ;;  %1366 = vmatprep.mubr.bf16.mxu0 %v1091_v2 }
 0x23f   :  { %v890_v14 = vadd.f32 %v889_v11, %v2807_v12  ;;  %v891_v15 = vpop.f32.mrb[11].mxu1  ;;  %1367 = vmatmul.mubr.bf16.gmra.mrb[68].mxu0 %v1090_v1  ;;  %v1032_v18 = vmax.f32 %v886_v6, 0.0 }
 0x240   :  { %v892_v16 = vadd.f32 %v891_v15, %v2810_v13  ;;  %2147 = vmatpush3.bf16.msra.mxu0 %v2422_v49  ;;  %v1033_v21 = vmax.f32 %v888_v10, 0.0 }
 0x241   :  { %v1034_v19 = vmax.f32 %v890_v14, 0.0  ;;  %2148 = vmatprep.subr.bf16.mxu0 %v2423_v52 }
 0x242   :  { %v1035_v22 = vmax.f32 %v892_v16, 0.0 }
 0x243   :  { %v1092_v23 = vpack.c.bf16 %v1034_v19, %v1032_v18 }
 0x244   :  { %v1093_v24 = vpack.c.bf16 %v1035_v22, %v1033_v21  ;;  %v895_v25 = vpop.f32.mrb[12].mxu1  ;;  %2149 = vmatpush3.bf16.msra.mxu0 %v2424_v58 }
 0x245   :  { %v896_v27 = vadd.f32 %v895_v25, %v2807_v12  ;;  %v897_v28 = vpop.f32.mrb[13].mxu1  ;;  %2150 = vmatprep.subr.bf16.mxu0 %v2425_v61 }
 0x246   :  { %v898_v29 = vadd.f32 %v897_v28, %v2810_v13  ;;  %v899_v30 = vpop.f32.mrb[14].mxu1  ;;  %1376 = vmatprep.mubr.bf16.mxu0 %v1093_v24 }
 0x247   :  { %v900_v31 = vadd.f32 %v899_v30, %v2807_v12  ;;  %v901_v32 = vpop.f32.mrb[15].mxu1  ;;  %1377 = vmatmul.mubr.bf16.gmra.mrb[72].mxu0 %v1092_v23  ;;  %v1036_v34 = vmax.f32 %v896_v27, 0.0 }
 0x248   :  { %v902_v33 = vadd.f32 %v901_v32, %v2810_v13  ;;  %2151 = vmatpush3.bf16.msra.mxu0 %v2426_v5  ;;  %v1037_v36 = vmax.f32 %v898_v29, 0.0 }
 0x249   :  { %v1038_v35 = vmax.f32 %v900_v31, 0.0  ;;  %2152 = vmatprep.subr.bf16.mxu0 %v2427_v9 }
 0x24a   :  { %v1039_v37 = vmax.f32 %v902_v33, 0.0 }
 0x24b   :  { %v1094_v38 = vpack.c.bf16 %v1038_v35, %v1036_v34 }
 0x24c   :  { %v1095_v39 = vpack.c.bf16 %v1039_v37, %v1037_v36  ;;  %v905_v40 = vpop.f32.mrb[16].mxu1  ;;  %2153 = vmatpush3.bf16.msra.mxu0 %v2428_v17 }
 0x24d   :  { %v906_v41 = vadd.f32 %v905_v40, %v2807_v12  ;;  %v907_v42 = vpop.f32.mrb[17].mxu1  ;;  %2154 = vmatprep.subr.bf16.mxu0 %v2429_v20 }
 0x24e   :  { %v908_v43 = vadd.f32 %v907_v42, %v2810_v13  ;;  %v909_v44 = vpop.f32.mrb[18].mxu1  ;;  %1386 = vmatprep.mubr.bf16.mxu0 %v1095_v39 }
 0x24f   :  { %v910_v45 = vadd.f32 %v909_v44, %v2807_v12  ;;  %v911_v46 = vpop.f32.mrb[19].mxu1  ;;  %1387 = vmatmul.mubr.bf16.gmra.mrb[76].mxu0 %v1094_v38  ;;  %v1040_v48 = vmax.f32 %v906_v41, 0.0 }
 0x250   :  { %v912_v47 = vadd.f32 %v911_v46, %v2810_v13  ;;  %2155 = vmatpush3.bf16.msra.mxu0 %v2430_v26  ;;  %v1041_v50 = vmax.f32 %v908_v43, 0.0 }
 0x251   :  { %v1042_v49 = vmax.f32 %v910_v45, 0.0 }
 0x252   :  { %v1043_v51 = vmax.f32 %v912_v47, 0.0 }
 0x253   :  { %v1096_v52 = vpack.c.bf16 %v1042_v49, %v1040_v48 }
 0x254   :  { %v1097_v53 = vpack.c.bf16 %v1043_v51, %v1041_v50  ;;  %v915_v54 = vpop.f32.mrb[20].mxu1 }
 0x255   :  { %v916_v55 = vadd.f32 %v915_v54, %v2807_v12  ;;  %v917_v56 = vpop.f32.mrb[21].mxu1 }
 0x256   :  { %v918_v57 = vadd.f32 %v917_v56, %v2810_v13  ;;  %v919_v58 = vpop.f32.mrb[22].mxu1  ;;  %1396 = vmatprep.mubr.bf16.mxu0 %v1097_v53 }
 0x257   :  { %v920_v59 = vadd.f32 %v919_v58, %v2807_v12  ;;  %v921_v60 = vpop.f32.mrb[23].mxu1  ;;  %1397 = vmatmul.mubr.bf16.gmra.mrb[80].mxu0 %v1096_v52  ;;  %v1044_v62 = vmax.f32 %v916_v55, 0.0 }
 0x258   :  { %v922_v61 = vadd.f32 %v921_v60, %v2810_v13  ;;  %v1045_v1 = vmax.f32 %v918_v57, 0.0 }
 0x259   :  { %v1046_v63 = vmax.f32 %v920_v59, 0.0 }
 0x25a   :  { %v1047_v2 = vmax.f32 %v922_v61, 0.0 }
 0x25b   :  { %v1098_v3 = vpack.c.bf16 %v1046_v63, %v1044_v62 }
 0x25c   :  { %v1099_v5 = vpack.c.bf16 %v1047_v2, %v1045_v1  ;;  %v925_v6 = vpop.f32.mrb[24].mxu1 }
 0x25d   :  { %v926_v7 = vadd.f32 %v925_v6, %v2807_v12  ;;  %v927_v9 = vpop.f32.mrb[25].mxu1 }
 0x25e   :  { %v928_v10 = vadd.f32 %v927_v9, %v2810_v13  ;;  %v929_v11 = vpop.f32.mrb[26].mxu1  ;;  %1406 = vmatprep.mubr.bf16.mxu0 %v1099_v5 }
 0x25f   :  { %v930_v14 = vadd.f32 %v929_v11, %v2807_v12  ;;  %v931_v15 = vpop.f32.mrb[27].mxu1  ;;  %1407 = vmatmul.mubr.bf16.gmra.mrb[84].mxu0 %v1098_v3  ;;  %v1048_v17 = vmax.f32 %v926_v7, 0.0 }
 0x260   :  { %v932_v16 = vadd.f32 %v931_v15, %v2810_v13  ;;  %v1049_v19 = vmax.f32 %v928_v10, 0.0 }
 0x261   :  { %v1050_v18 = vmax.f32 %v930_v14, 0.0 }
 0x262   :  { %v1051_v20 = vmax.f32 %v932_v16, 0.0 }
 0x263   :  { %v1100_v21 = vpack.c.bf16 %v1050_v18, %v1048_v17 }
 0x264   :  { %v1101_v22 = vpack.c.bf16 %v1051_v20, %v1049_v19  ;;  %v935_v23 = vpop.f32.mrb[28].mxu1 }
 0x265   :  { %v936_v24 = vadd.f32 %v935_v23, %v2807_v12  ;;  %v937_v25 = vpop.f32.mrb[29].mxu1 }
 0x266   :  { %v938_v26 = vadd.f32 %v937_v25, %v2810_v13  ;;  %v939_v27 = vpop.f32.mrb[30].mxu1  ;;  %1416 = vmatprep.mubr.bf16.mxu0 %v1101_v22 }
 0x267   :  { %v940_v28 = vadd.f32 %v939_v27, %v2807_v12  ;;  %v941_v29 = vpop.f32.mrb[31].mxu1  ;;  %1417 = vmatmul.mubr.bf16.gmra.mrb[88].mxu0 %v1100_v21  ;;  %v1052_v31 = vmax.f32 %v936_v24, 0.0 }
 0x268   :  { %v942_v30 = vadd.f32 %v941_v29, %v2810_v13  ;;  %v1053_v33 = vmax.f32 %v938_v26, 0.0 }
 0x269   :  { %v1054_v32 = vmax.f32 %v940_v28, 0.0 }
 0x26a   :  { %v1055_v34 = vmax.f32 %v942_v30, 0.0 }
 0x26b   :  { %v1102_v35 = vpack.c.bf16 %v1054_v32, %v1052_v31 }
 0x26c   :  { %v1103_v36 = vpack.c.bf16 %v1055_v34, %v1053_v33  ;;  %v945_v37 = vpop.f32.mrb[32].mxu1 }
 0x26d   :  { %v946_v38 = vadd.f32 %v945_v37, %v2807_v12  ;;  %v947_v39 = vpop.f32.mrb[33].mxu1 }
 0x26e   :  { %v948_v40 = vadd.f32 %v947_v39, %v2810_v13  ;;  %v949_v41 = vpop.f32.mrb[34].mxu1  ;;  %1426 = vmatprep.mubr.bf16.mxu0 %v1103_v36 }
 0x26f   :  { %v950_v42 = vadd.f32 %v949_v41, %v2807_v12  ;;  %v951_v43 = vpop.f32.mrb[35].mxu1  ;;  %1427 = vmatmul.mubr.bf16.gmra.mrb[92].mxu0 %v1102_v35  ;;  %v1056_v45 = vmax.f32 %v946_v38, 0.0  ;;  %v2431_v41 = vld [vmem:[#allocation10 + $0x78] sm:$0xff]  }
 0x270   :  { %v952_v44 = vadd.f32 %v951_v43, %v2810_v13  ;;  %v1057_v47 = vmax.f32 %v948_v40, 0.0  ;;  %v2432_v43 = vld [vmem:[#allocation10 + $0x38] sm:$0xff]   ;;  %2156 = vmatprep.subr.bf16.mxu0 %v2431_v41  ;;  %2261 = vmatprep.subr.bf16.mxu1 %v2431_v41 }
 0x271   :  { %v1058_v46 = vmax.f32 %v950_v42, 0.0  ;;  %2157 = vmatpush3.bf16.msra.mxu0 %v2432_v43  ;;  %2269 = vmatpush3.bf16.msra.mxu1 %v2432_v43 }
 0x272   :  { %v1059_v48 = vmax.f32 %v952_v44, 0.0 }
 0x273   :  { %v1104_v49 = vpack.c.bf16 %v1058_v46, %v1056_v45 }
 0x274   :  { %v1105_v50 = vpack.c.bf16 %v1059_v48, %v1057_v47  ;;  %v955_v51 = vpop.f32.mrb[36].mxu1 }
 0x275   :  { %v956_v52 = vadd.f32 %v955_v51, %v2807_v12  ;;  %v957_v53 = vpop.f32.mrb[37].mxu1 }
 0x276   :  { %v958_v54 = vadd.f32 %v957_v53, %v2810_v13  ;;  %v959_v55 = vpop.f32.mrb[38].mxu1  ;;  %1436 = vmatprep.mubr.bf16.mxu0 %v1105_v50 }
 0x277   :  { %v960_v56 = vadd.f32 %v959_v55, %v2807_v12  ;;  %v961_v57 = vpop.f32.mrb[39].mxu1  ;;  %1437 = vmatmul.mubr.bf16.gmra.mrb[96].mxu0 %v1104_v49  ;;  %v1060_v59 = vmax.f32 %v956_v52, 0.0 }
 0x278   :  { %v962_v58 = vadd.f32 %v961_v57, %v2810_v13  ;;  %v1061_v61 = vmax.f32 %v958_v54, 0.0 }
 0x279   :  { %v1062_v60 = vmax.f32 %v960_v56, 0.0 }
 0x27a   :  { %v1063_v62 = vmax.f32 %v962_v58, 0.0 }
 0x27b   :  { %v1106_v63 = vpack.c.bf16 %v1062_v60, %v1060_v59 }
 0x27c   :  { %v1107_v1 = vpack.c.bf16 %v1063_v62, %v1061_v61  ;;  %v965_v2 = vpop.f32.mrb[40].mxu1 }
 0x27d   :  { %v966_v3 = vadd.f32 %v965_v2, %v2807_v12  ;;  %v967_v5 = vpop.f32.mrb[41].mxu1 }
 0x27e   :  { %v968_v6 = vadd.f32 %v967_v5, %v2810_v13  ;;  %v969_v7 = vpop.f32.mrb[42].mxu1  ;;  %1446 = vmatprep.mubr.bf16.mxu0 %v1107_v1 }
 0x27f   :  { %v970_v9 = vadd.f32 %v969_v7, %v2807_v12  ;;  %v971_v10 = vpop.f32.mrb[43].mxu1  ;;  %1447 = vmatmul.mubr.bf16.gmra.mrb[100].mxu0 %v1106_v63  ;;  %v1064_v14 = vmax.f32 %v966_v3, 0.0 }
 0x280   :  { %v972_v11 = vadd.f32 %v971_v10, %v2810_v13  ;;  %v1065_v16 = vmax.f32 %v968_v6, 0.0 }
 0x281   :  { %v1066_v15 = vmax.f32 %v970_v9, 0.0 }
 0x282   :  { %v1067_v17 = vmax.f32 %v972_v11, 0.0 }
 0x283   :  { %v1108_v18 = vpack.c.bf16 %v1066_v15, %v1064_v14 }
 0x284   :  { %v1109_v19 = vpack.c.bf16 %v1067_v17, %v1065_v16  ;;  %v975_v20 = vpop.f32.mrb[44].mxu1 }
 0x285   :  { %v976_v21 = vadd.f32 %v975_v20, %v2807_v12  ;;  %v977_v22 = vpop.f32.mrb[45].mxu1 }
 0x286   :  { %v978_v23 = vadd.f32 %v977_v22, %v2810_v13  ;;  %v979_v24 = vpop.f32.mrb[46].mxu1  ;;  %1456 = vmatprep.mubr.bf16.mxu0 %v1109_v19 }
 0x287   :  { %v980_v25 = vadd.f32 %v979_v24, %v2807_v12  ;;  %v981_v26 = vpop.f32.mrb[47].mxu1  ;;  %1457 = vmatmul.mubr.bf16.gmra.mrb[104].mxu0 %v1108_v18  ;;  %v1068_v28 = vmax.f32 %v976_v21, 0.0 }
 0x288   :  { %v982_v27 = vadd.f32 %v981_v26, %v2810_v13  ;;  %v1069_v30 = vmax.f32 %v978_v23, 0.0 }
 0x289   :  { %v1070_v29 = vmax.f32 %v980_v25, 0.0 }
 0x28a   :  { %v1071_v31 = vmax.f32 %v982_v27, 0.0 }
 0x28b   :  { %v1110_v32 = vpack.c.bf16 %v1070_v29, %v1068_v28 }
 0x28c   :  { %v1111_v33 = vpack.c.bf16 %v1071_v31, %v1069_v30  ;;  %v985_v34 = vpop.f32.mrb[48].mxu1 }
 0x28d   :  { %v986_v35 = vadd.f32 %v985_v34, %v2807_v12  ;;  %v987_v36 = vpop.f32.mrb[49].mxu1 }
 0x28e   :  { %v988_v37 = vadd.f32 %v987_v36, %v2810_v13  ;;  %v989_v38 = vpop.f32.mrb[50].mxu1  ;;  %1466 = vmatprep.mubr.bf16.mxu0 %v1111_v33  ;;  %v1152_v33 = vld [vmem:[%s3076_s6] sm:$0x3] }
 0x28f   :  { %v990_v39 = vadd.f32 %v989_v38, %v2807_v12  ;;  %v991_v40 = vpop.f32.mrb[51].mxu1  ;;  %1467 = vmatmul.mubr.bf16.gmra.mrb[108].mxu0 %v1110_v32  ;;  %v1072_v44 = vmax.f32 %v986_v35, 0.0  ;;  %v2880_v34 = vrot.slane %v1152_v33, %v2726_v8 }
 0x290   :  { %v992_v42 = vadd.f32 %v991_v40, %v2810_v13  ;;  %v1073_v46 = vmax.f32 %v988_v37, 0.0 }
 0x291   :  { %v1074_v45 = vmax.f32 %v990_v39, 0.0 }
 0x292   :  { %v1075_v47 = vmax.f32 %v992_v42, 0.0 }
 0x293   :  { %v1112_v48 = vpack.c.bf16 %v1074_v45, %v1072_v44 }
 0x294   :  { %v1113_v49 = vpack.c.bf16 %v1075_v47, %v1073_v46  ;;  %v995_v50 = vpop.f32.mrb[52].mxu1 }
 0x295   :  { %v996_v51 = vadd.f32 %v995_v50, %v2807_v12  ;;  %v997_v52 = vpop.f32.mrb[53].mxu1 }
 0x296   :  { %v998_v53 = vadd.f32 %v997_v52, %v2810_v13  ;;  %v999_v54 = vpop.f32.mrb[54].mxu1  ;;  %1476 = vmatprep.mubr.bf16.mxu0 %v1113_v49 }
 0x297   :  { %v1000_v55 = vadd.f32 %v999_v54, %v2807_v12  ;;  %v1001_v56 = vpop.f32.mrb[55].mxu1  ;;  %1477 = vmatmul.mubr.bf16.gmra.mrb[112].mxu0 %v1112_v48  ;;  %v1076_v58 = vmax.f32 %v996_v51, 0.0 }
 0x298   :  { %v1002_v57 = vadd.f32 %v1001_v56, %v2810_v13  ;;  %v1077_v60 = vmax.f32 %v998_v53, 0.0 }
 0x299   :  { %v1078_v59 = vmax.f32 %v1000_v55, 0.0 }
 0x29a   :  { %v1079_v61 = vmax.f32 %v1002_v57, 0.0 }
 0x29b   :  { %v1114_v62 = vpack.c.bf16 %v1078_v59, %v1076_v58 }
 0x29c   :  { %v1115_v63 = vpack.c.bf16 %v1079_v61, %v1077_v60  ;;  %v1005_v1 = vpop.f32.mrb[56].mxu1 }
 0x29d   :  { %v1006_v2 = vadd.f32 %v1005_v1, %v2807_v12  ;;  %v1007_v3 = vpop.f32.mrb[57].mxu1 }
 0x29e   :  { %v1008_v5 = vadd.f32 %v1007_v3, %v2810_v13  ;;  %v1009_v6 = vpop.f32.mrb[58].mxu1  ;;  %1486 = vmatprep.mubr.bf16.mxu0 %v1115_v63 }
 0x29f   :  { %v1010_v7 = vadd.f32 %v1009_v6, %v2807_v12  ;;  %v1011_v9 = vpop.f32.mrb[59].mxu1  ;;  %1487 = vmatmul.mubr.bf16.gmra.mrb[116].mxu0 %v1114_v62  ;;  %v1080_v11 = vmax.f32 %v1006_v2, 0.0 }
 0x2a0   :  { %v1012_v10 = vadd.f32 %v1011_v9, %v2810_v13  ;;  %v1081_v15 = vmax.f32 %v1008_v5, 0.0 }
 0x2a1   :  { %v1082_v14 = vmax.f32 %v1010_v7, 0.0 }
 0x2a2   :  { %v1083_v16 = vmax.f32 %v1012_v10, 0.0 }
 0x2a3   :  { %v1116_v17 = vpack.c.bf16 %v1082_v14, %v1080_v11 }
 0x2a4   :  { %v1117_v18 = vpack.c.bf16 %v1083_v16, %v1081_v15  ;;  %v1015_v19 = vpop.f32.mrb[60].mxu1 }
 0x2a5   :  { %v1016_v20 = vadd.f32 %v1015_v19, %v2807_v12  ;;  %v1017_v21 = vpop.f32.mrb[61].mxu1 }
 0x2a6   :  { %v1018_v22 = vadd.f32 %v1017_v21, %v2810_v13  ;;  %v1019_v23 = vpop.f32.mrb[62].mxu1  ;;  %1496 = vmatprep.mubr.bf16.mxu0 %v1117_v18 }
 0x2a7   :  { %v1020_v24 = vadd.f32 %v1019_v23, %v2807_v12  ;;  %v1021_v25 = vpop.f32.mrb[63].mxu1  ;;  %1497 = vmatmul.mubr.bf16.gmra.mrb[120].mxu0 %v1116_v17  ;;  %v1084_v27 = vmax.f32 %v1016_v20, 0.0  ;;  %v2883_v12 = vrot.slane %v1152_v33, %v2731_v0 }
 0x2a8   :  { %v1022_v26 = vadd.f32 %v1021_v25, %v2810_v13  ;;  %v1085_v29 = vmax.f32 %v1018_v22, 0.0 }
 0x2a9   :  { %v1086_v28 = vmax.f32 %v1020_v24, 0.0 }
 0x2aa   :  { %v1087_v30 = vmax.f32 %v1022_v26, 0.0 }
 0x2ab   :  { %v1118_v31 = vpack.c.bf16 %v1086_v28, %v1084_v27 }
 0x2ac   :  { %v1119_v32 = vpack.c.bf16 %v1087_v30, %v1085_v29 }
 0x2ae   :  { %1506 = vmatprep.mubr.bf16.mxu0 %v1119_v32 }
 0x2af   :  { %1507 = vmatmul.mubr.bf16.gmra.mrb[124].mxu0 %v1118_v31 }
 0x30a   :  { %v1358_v35 = vpop.f32.mrb[64].mxu0 }
 0x30b   :  { %v1359_v13 = vadd.f32 %v1358_v35, %v2880_v34  ;;  %v1360_v36 = vpop.f32.mrb[65].mxu0 }
 0x30c   :  { %v1361_v37 = vadd.f32 %v1360_v36, %v2883_v12  ;;  %v1362_v38 = vpop.f32.mrb[66].mxu0 }
 0x30d   :  { %v1363_v39 = vadd.f32 %v1362_v38, %v2880_v34  ;;  %v1364_v40 = vpop.f32.mrb[67].mxu0  ;;  %v1517_v42 = vmax.f32 %v1359_v13, 0.0 }
 0x30e   :  { %v1365_v41 = vadd.f32 %v1364_v40, %v2883_v12  ;;  %v1518_v44 = vmax.f32 %v1361_v37, 0.0 }
 0x30f   :  { %v1519_v43 = vmax.f32 %v1363_v39, 0.0 }
 0x310   :  { %v1520_v8 = vmax.f32 %v1365_v41, 0.0 }
 0x311   :  { %v1581_v45 = vpack.c.bf16 %v1519_v43, %v1517_v42 }
 0x312   :  { %v1582_v46 = vpack.c.bf16 %v1520_v8, %v1518_v44  ;;  %v1368_v0 = vpop.f32.mrb[68].mxu0 }
 0x313   :  { %v1369_v47 = vadd.f32 %v1368_v0, %v2880_v34  ;;  %v1370_v48 = vpop.f32.mrb[69].mxu0 }
 0x314   :  { %v1371_v49 = vadd.f32 %v1370_v48, %v2883_v12  ;;  %v1372_v50 = vpop.f32.mrb[70].mxu0  ;;  %1780 = vmatprep.mubr.bf16.mxu0 %v1582_v46 }
 0x315   :  { %v1373_v51 = vadd.f32 %v1372_v50, %v2880_v34  ;;  %v1374_v52 = vpop.f32.mrb[71].mxu0  ;;  %1781 = vmatmul.mubr.bf16.vlgmr.msra.gmra.mrb[128].mxu0 %v1581_v45  ;;  %v1521_v54 = vmax.f32 %v1369_v47, 0.0 }
 0x316   :  { %v1375_v53 = vadd.f32 %v1374_v52, %v2883_v12  ;;  %v1522_v56 = vmax.f32 %v1371_v49, 0.0 }
 0x317   :  { %v1523_v55 = vmax.f32 %v1373_v51, 0.0 }
 0x318   :  { %v1524_v57 = vmax.f32 %v1375_v53, 0.0 }
 0x319   :  { %v1583_v58 = vpack.c.bf16 %v1523_v55, %v1521_v54 }
 0x31a   :  { %v1584_v59 = vpack.c.bf16 %v1524_v57, %v1522_v56  ;;  %v1378_v60 = vpop.f32.mrb[72].mxu0 }
 0x31b   :  { %v1379_v61 = vadd.f32 %v1378_v60, %v2880_v34  ;;  %v1380_v62 = vpop.f32.mrb[73].mxu0 }
 0x31c   :  { %v1381_v63 = vadd.f32 %v1380_v62, %v2883_v12  ;;  %v1382_v1 = vpop.f32.mrb[74].mxu0  ;;  %1788 = vmatprep.mubr.bf16.mxu0 %v1584_v59 }
 0x31d   :  { %v1383_v2 = vadd.f32 %v1382_v1, %v2880_v34  ;;  %v1384_v3 = vpop.f32.mrb[75].mxu0  ;;  %1789 = vmatmul.mubr.bf16.gmra.mrb[132].mxu0 %v1583_v58  ;;  %v1525_v6 = vmax.f32 %v1379_v61, 0.0 }
 0x31e   :  { %v1385_v5 = vadd.f32 %v1384_v3, %v2883_v12  ;;  %v1526_v9 = vmax.f32 %v1381_v63, 0.0 }
 0x31f   :  { %v1527_v7 = vmax.f32 %v1383_v2, 0.0 }
 0x320   :  { %v1528_v10 = vmax.f32 %v1385_v5, 0.0 }
 0x321   :  { %v1585_v11 = vpack.c.bf16 %v1527_v7, %v1525_v6 }
 0x322   :  { %v1586_v14 = vpack.c.bf16 %v1528_v10, %v1526_v9  ;;  %v1388_v15 = vpop.f32.mrb[76].mxu0 }
 0x323   :  { %v1389_v16 = vadd.f32 %v1388_v15, %v2880_v34  ;;  %v1390_v17 = vpop.f32.mrb[77].mxu0 }
 0x324   :  { %v1391_v18 = vadd.f32 %v1390_v17, %v2883_v12  ;;  %v1392_v19 = vpop.f32.mrb[78].mxu0  ;;  %1796 = vmatprep.mubr.bf16.mxu1 %v1586_v14 }
 0x325   :  { %v1393_v20 = vadd.f32 %v1392_v19, %v2880_v34  ;;  %v1394_v21 = vpop.f32.mrb[79].mxu0  ;;  %1797 = vmatmul.mubr.bf16.vlgmr.msra.gmra.mrb[64].mxu1 %v1585_v11  ;;  %v1529_v23 = vmax.f32 %v1389_v16, 0.0 }
 0x326   :  { %v1395_v22 = vadd.f32 %v1394_v21, %v2883_v12  ;;  %v1530_v25 = vmax.f32 %v1391_v18, 0.0 }
 0x327   :  { %v1531_v24 = vmax.f32 %v1393_v20, 0.0 }
 0x328   :  { %v1532_v26 = vmax.f32 %v1395_v22, 0.0 }
 0x329   :  { %v1587_v27 = vpack.c.bf16 %v1531_v24, %v1529_v23 }
 0x32a   :  { %v1588_v28 = vpack.c.bf16 %v1532_v26, %v1530_v25  ;;  %v1398_v29 = vpop.f32.mrb[80].mxu0 }
 0x32b   :  { %v1399_v30 = vadd.f32 %v1398_v29, %v2880_v34  ;;  %v1400_v31 = vpop.f32.mrb[81].mxu0 }
 0x32c   :  { %v1401_v32 = vadd.f32 %v1400_v31, %v2883_v12  ;;  %v1402_v33 = vpop.f32.mrb[82].mxu0  ;;  %1804 = vmatprep.mubr.bf16.mxu1 %v1588_v28 }
 0x32d   :  { %v1403_v35 = vadd.f32 %v1402_v33, %v2880_v34  ;;  %v1404_v13 = vpop.f32.mrb[83].mxu0  ;;  %1805 = vmatmul.mubr.bf16.gmra.mrb[68].mxu1 %v1587_v27  ;;  %v1533_v37 = vmax.f32 %v1399_v30, 0.0 }
 0x32e   :  { %v1405_v36 = vadd.f32 %v1404_v13, %v2883_v12  ;;  %v1534_v39 = vmax.f32 %v1401_v32, 0.0 }
 0x32f   :  { %v1535_v38 = vmax.f32 %v1403_v35, 0.0 }
 0x330   :  { %v1536_v40 = vmax.f32 %v1405_v36, 0.0 }
 0x331   :  { %v1589_v41 = vpack.c.bf16 %v1535_v38, %v1533_v37 }
 0x332   :  { %v1590_v42 = vpack.c.bf16 %v1536_v40, %v1534_v39  ;;  %v1408_v43 = vpop.f32.mrb[84].mxu0 }
 0x333   :  { %v1409_v44 = vadd.f32 %v1408_v43, %v2880_v34  ;;  %v1410_v8 = vpop.f32.mrb[85].mxu0 }
 0x334   :  { %v1411_v45 = vadd.f32 %v1410_v8, %v2883_v12  ;;  %v1412_v46 = vpop.f32.mrb[86].mxu0  ;;  %1812 = vmatprep.mubr.bf16.mxu1 %v1590_v42 }
 0x335   :  { %v1413_v0 = vadd.f32 %v1412_v46, %v2880_v34  ;;  %v1414_v47 = vpop.f32.mrb[87].mxu0  ;;  %1813 = vmatmul.mubr.bf16.gmra.mrb[72].mxu1 %v1589_v41  ;;  %v1537_v49 = vmax.f32 %v1409_v44, 0.0 }
 0x336   :  { %v1415_v48 = vadd.f32 %v1414_v47, %v2883_v12  ;;  %v1538_v51 = vmax.f32 %v1411_v45, 0.0 }
 0x337   :  { %v1539_v50 = vmax.f32 %v1413_v0, 0.0 }
 0x338   :  { %v1540_v52 = vmax.f32 %v1415_v48, 0.0 }
 0x339   :  { %v1591_v53 = vpack.c.bf16 %v1539_v50, %v1537_v49 }
 0x33a   :  { %v1592_v54 = vpack.c.bf16 %v1540_v52, %v1538_v51  ;;  %v1418_v55 = vpop.f32.mrb[88].mxu0 }
 0x33b   :  { %v1419_v56 = vadd.f32 %v1418_v55, %v2880_v34  ;;  %v1420_v57 = vpop.f32.mrb[89].mxu0 }
 0x33c   :  { %v1421_v58 = vadd.f32 %v1420_v57, %v2883_v12  ;;  %v1422_v59 = vpop.f32.mrb[90].mxu0  ;;  %1820 = vmatprep.mubr.bf16.mxu1 %v1592_v54 }
 0x33d   :  { %v1423_v60 = vadd.f32 %v1422_v59, %v2880_v34  ;;  %v1424_v61 = vpop.f32.mrb[91].mxu0  ;;  %1821 = vmatmul.mubr.bf16.gmra.mrb[76].mxu1 %v1591_v53  ;;  %v1541_v63 = vmax.f32 %v1419_v56, 0.0 }
 0x33e   :  { %v1425_v62 = vadd.f32 %v1424_v61, %v2883_v12  ;;  %v1542_v2 = vmax.f32 %v1421_v58, 0.0 }
 0x33f   :  { %v1543_v1 = vmax.f32 %v1423_v60, 0.0 }
 0x340   :  { %v1544_v3 = vmax.f32 %v1425_v62, 0.0 }
 0x341   :  { %v1593_v5 = vpack.c.bf16 %v1543_v1, %v1541_v63 }
 0x342   :  { %v1594_v6 = vpack.c.bf16 %v1544_v3, %v1542_v2  ;;  %v1428_v7 = vpop.f32.mrb[92].mxu0 }
 0x343   :  { %v1429_v9 = vadd.f32 %v1428_v7, %v2880_v34  ;;  %v1430_v10 = vpop.f32.mrb[93].mxu0 }
 0x344   :  { %v1431_v11 = vadd.f32 %v1430_v10, %v2883_v12  ;;  %v1432_v14 = vpop.f32.mrb[94].mxu0  ;;  %1828 = vmatprep.mubr.bf16.mxu1 %v1594_v6 }
 0x345   :  { %v1433_v15 = vadd.f32 %v1432_v14, %v2880_v34  ;;  %v1434_v16 = vpop.f32.mrb[95].mxu0  ;;  %1829 = vmatmul.mubr.bf16.gmra.mrb[80].mxu1 %v1593_v5  ;;  %v1545_v18 = vmax.f32 %v1429_v9, 0.0 }
 0x346   :  { %v1435_v17 = vadd.f32 %v1434_v16, %v2883_v12  ;;  %v1546_v20 = vmax.f32 %v1431_v11, 0.0 }
 0x347   :  { %v1547_v19 = vmax.f32 %v1433_v15, 0.0 }
 0x348   :  { %v1548_v21 = vmax.f32 %v1435_v17, 0.0 }
 0x349   :  { %v1595_v22 = vpack.c.bf16 %v1547_v19, %v1545_v18 }
 0x34a   :  { %v1596_v23 = vpack.c.bf16 %v1548_v21, %v1546_v20  ;;  %v1438_v24 = vpop.f32.mrb[96].mxu0 }
 0x34b   :  { %v1439_v25 = vadd.f32 %v1438_v24, %v2880_v34  ;;  %v1440_v26 = vpop.f32.mrb[97].mxu0 }
 0x34c   :  { %v1441_v27 = vadd.f32 %v1440_v26, %v2883_v12  ;;  %v1442_v28 = vpop.f32.mrb[98].mxu0  ;;  %1836 = vmatprep.mubr.bf16.mxu1 %v1596_v23 }
 0x34d   :  { %v1443_v29 = vadd.f32 %v1442_v28, %v2880_v34  ;;  %v1444_v30 = vpop.f32.mrb[99].mxu0  ;;  %1837 = vmatmul.mubr.bf16.gmra.mrb[84].mxu1 %v1595_v22  ;;  %v1549_v32 = vmax.f32 %v1439_v25, 0.0 }
 0x34e   :  { %v1445_v31 = vadd.f32 %v1444_v30, %v2883_v12  ;;  %v1550_v35 = vmax.f32 %v1441_v27, 0.0 }
 0x34f   :  { %v1551_v33 = vmax.f32 %v1443_v29, 0.0 }
 0x350   :  { %v1552_v13 = vmax.f32 %v1445_v31, 0.0 }
 0x351   :  { %v1597_v36 = vpack.c.bf16 %v1551_v33, %v1549_v32 }
 0x352   :  { %v1598_v37 = vpack.c.bf16 %v1552_v13, %v1550_v35  ;;  %v1448_v38 = vpop.f32.mrb[100].mxu0 }
 0x353   :  { %v1449_v39 = vadd.f32 %v1448_v38, %v2880_v34  ;;  %v1450_v40 = vpop.f32.mrb[101].mxu0 }
 0x354   :  { %v1451_v41 = vadd.f32 %v1450_v40, %v2883_v12  ;;  %v1452_v42 = vpop.f32.mrb[102].mxu0  ;;  %1844 = vmatprep.mubr.bf16.mxu1 %v1598_v37 }
 0x355   :  { %v1453_v43 = vadd.f32 %v1452_v42, %v2880_v34  ;;  %v1454_v44 = vpop.f32.mrb[103].mxu0  ;;  %1845 = vmatmul.mubr.bf16.gmra.mrb[88].mxu1 %v1597_v36  ;;  %v1553_v45 = vmax.f32 %v1449_v39, 0.0 }
 0x356   :  { %v1455_v8 = vadd.f32 %v1454_v44, %v2883_v12  ;;  %v1554_v0 = vmax.f32 %v1451_v41, 0.0 }
 0x357   :  { %v1555_v46 = vmax.f32 %v1453_v43, 0.0 }
 0x358   :  { %v1556_v47 = vmax.f32 %v1455_v8, 0.0 }
 0x359   :  { %v1599_v48 = vpack.c.bf16 %v1555_v46, %v1553_v45 }
 0x35a   :  { %v1600_v49 = vpack.c.bf16 %v1556_v47, %v1554_v0  ;;  %v1458_v50 = vpop.f32.mrb[104].mxu0 }
 0x35b   :  { %v1459_v51 = vadd.f32 %v1458_v50, %v2880_v34  ;;  %v1460_v52 = vpop.f32.mrb[105].mxu0 }
 0x35c   :  { %v1461_v53 = vadd.f32 %v1460_v52, %v2883_v12  ;;  %v1462_v54 = vpop.f32.mrb[106].mxu0  ;;  %1852 = vmatprep.mubr.bf16.mxu1 %v1600_v49 }
 0x35d   :  { %v1463_v55 = vadd.f32 %v1462_v54, %v2880_v34  ;;  %v1464_v56 = vpop.f32.mrb[107].mxu0  ;;  %1853 = vmatmul.mubr.bf16.gmra.mrb[92].mxu1 %v1599_v48  ;;  %v1557_v58 = vmax.f32 %v1459_v51, 0.0 }
 0x35e   :  { %v1465_v57 = vadd.f32 %v1464_v56, %v2883_v12  ;;  %v1558_v60 = vmax.f32 %v1461_v53, 0.0 }
 0x35f   :  { %v1559_v59 = vmax.f32 %v1463_v55, 0.0 }
 0x360   :  { %v1560_v61 = vmax.f32 %v1465_v57, 0.0 }
 0x361   :  { %v1601_v62 = vpack.c.bf16 %v1559_v59, %v1557_v58 }
 0x362   :  { %v1602_v63 = vpack.c.bf16 %v1560_v61, %v1558_v60  ;;  %v1468_v1 = vpop.f32.mrb[108].mxu0 }
 0x363   :  { %v1469_v2 = vadd.f32 %v1468_v1, %v2880_v34  ;;  %v1470_v3 = vpop.f32.mrb[109].mxu0 }
 0x364   :  { %v1471_v5 = vadd.f32 %v1470_v3, %v2883_v12  ;;  %v1472_v6 = vpop.f32.mrb[110].mxu0  ;;  %1860 = vmatprep.mubr.bf16.mxu1 %v1602_v63 }
 0x365   :  { %v1473_v7 = vadd.f32 %v1472_v6, %v2880_v34  ;;  %v1474_v9 = vpop.f32.mrb[111].mxu0  ;;  %1861 = vmatmul.mubr.bf16.gmra.mrb[96].mxu1 %v1601_v62  ;;  %v1561_v11 = vmax.f32 %v1469_v2, 0.0 }
 0x366   :  { %v1475_v10 = vadd.f32 %v1474_v9, %v2883_v12  ;;  %v1562_v15 = vmax.f32 %v1471_v5, 0.0 }
 0x367   :  { %v1563_v14 = vmax.f32 %v1473_v7, 0.0 }
 0x368   :  { %v1564_v16 = vmax.f32 %v1475_v10, 0.0 }
 0x369   :  { %v1603_v17 = vpack.c.bf16 %v1563_v14, %v1561_v11  ;;  %v1910_v14 = vand.u32 127, %v152_v4 }
 0x36a   :  { %v1604_v18 = vpack.c.bf16 %v1564_v16, %v1562_v15  ;;  %v1478_v19 = vpop.f32.mrb[112].mxu0  ;;  %v2953_v16 = vld [vmem:[%s3078_s8] ss:$0 sm:$0xff]  ;;  %s2583_s8 = smov [#allocation11]  }
 0x36b   :  { %v1479_v20 = vadd.f32 %v1478_v19, %v2880_v34  ;;  %v1480_v21 = vpop.f32.mrb[113].mxu0  ;;  %vm1911_vm0 = vcmp.ge.s32.totalorder %v1910_v14, 16  ;;  %vm1912_vm1 = vcmp.lt.s32.totalorder %v1910_v14, 32  ;;  %s2015_s1 = sshll.u32 %s2583_s8, 4  ;;  %s2016_s1 = int_to_ptr.vmem [resolvable:$true] %s2015_s1 }
 0x36c   :  { %v1481_v22 = vadd.f32 %v1480_v21, %v2883_v12  ;;  %v1482_v23 = vpop.f32.mrb[114].mxu0  ;;  %1868 = vmatprep.mubr.bf16.mxu1 %v1604_v18  ;;  %vm2956_vm2 = vmand %vm1911_vm0, %vm1912_vm1  ;;  %s2543_s10 = scalar_lea.vmem %s2016_s1, 4096  ;;  %p2548_p13 = scmp.lt.s32.totalorder %s2016_s1, %s2016_s1 }
 0x36d   :  { %v1483_v24 = vadd.f32 %v1482_v23, %v2880_v34  ;;  %v1484_v25 = vpop.f32.mrb[115].mxu0  ;;  %1869 = vmatmul.mubr.bf16.gmra.mrb[100].mxu1 %v1603_v17  ;;  %v1565_v27 = vmax.f32 %v1479_v20, 0.0  ;;  %p2544_p12 = scmp.ne.s32.totalorder %s2016_s1, %s2543_s10  ;;  %p2549_p0 = scmp.lt.s32.totalorder %s2543_s10, %s2543_s10 }
 0x36e   :  { %v1485_v26 = vadd.f32 %v1484_v25, %v2883_v12  ;;  %v1566_v29 = vmax.f32 %v1481_v22, 0.0 }
 0x36f   :  { %v1567_v28 = vmax.f32 %v1483_v24, 0.0  ;;  %p2550_p1 = por %p2549_p0, %p2548_p13 }
 0x370   :  { %v1568_v30 = vmax.f32 %v1485_v26, 0.0 }
 0x371   :  { %v1605_v31 = vpack.c.bf16 %v1567_v28, %v1565_v27  ;;  %p2551_p2 = pnand %p2550_p1, %p2544_p12 }
 0x372   :  { %v1606_v32 = vpack.c.bf16 %v1568_v30, %v1566_v29  ;;  %v1488_v33 = vpop.f32.mrb[116].mxu0 }
 0x373   :  { %v1489_v35 = vadd.f32 %v1488_v33, %v2880_v34  ;;  %v1490_v13 = vpop.f32.mrb[117].mxu0 }
 0x374   :  { %v1491_v36 = vadd.f32 %v1490_v13, %v2883_v12  ;;  %v1492_v37 = vpop.f32.mrb[118].mxu0  ;;  %1876 = vmatprep.mubr.bf16.mxu1 %v1606_v32 }
 0x375   :  { %v1493_v38 = vadd.f32 %v1492_v37, %v2880_v34  ;;  %v1494_v39 = vpop.f32.mrb[119].mxu0  ;;  %1877 = vmatmul.mubr.bf16.gmra.mrb[104].mxu1 %v1605_v31  ;;  %v1569_v41 = vmax.f32 %v1489_v35, 0.0 }
 0x376   :  { %v1495_v40 = vadd.f32 %v1494_v39, %v2883_v12  ;;  %v1570_v43 = vmax.f32 %v1491_v36, 0.0 }
 0x377   :  { %v1571_v42 = vmax.f32 %v1493_v38, 0.0 }
 0x378   :  { %v1572_v44 = vmax.f32 %v1495_v40, 0.0 }
 0x379   :  { %v1607_v8 = vpack.c.bf16 %v1571_v42, %v1569_v41 }
 0x37a   :  { %v1608_v45 = vpack.c.bf16 %v1572_v44, %v1570_v43  ;;  %v1498_v46 = vpop.f32.mrb[120].mxu0 }
 0x37b   :  { %v1499_v0 = vadd.f32 %v1498_v46, %v2880_v34  ;;  %v1500_v47 = vpop.f32.mrb[121].mxu0 }
 0x37c   :  { %v1501_v48 = vadd.f32 %v1500_v47, %v2883_v12  ;;  %v1502_v49 = vpop.f32.mrb[122].mxu0  ;;  %1884 = vmatprep.mubr.bf16.mxu1 %v1608_v45 }
 0x37d   :  { %v1503_v50 = vadd.f32 %v1502_v49, %v2880_v34  ;;  %v1504_v51 = vpop.f32.mrb[123].mxu0  ;;  %1885 = vmatmul.mubr.bf16.gmra.mrb[108].mxu1 %v1607_v8  ;;  %v1573_v53 = vmax.f32 %v1499_v0, 0.0 }
 0x37e   :  { %v1505_v52 = vadd.f32 %v1504_v51, %v2883_v12  ;;  %v1574_v55 = vmax.f32 %v1501_v48, 0.0 }
 0x37f   :  { %v1575_v54 = vmax.f32 %v1503_v50, 0.0 }
 0x380   :  { %v1576_v56 = vmax.f32 %v1505_v52, 0.0 }
 0x381   :  { %v1609_v57 = vpack.c.bf16 %v1575_v54, %v1573_v53 }
 0x382   :  { %v1610_v58 = vpack.c.bf16 %v1576_v56, %v1574_v55  ;;  %v1508_v59 = vpop.f32.mrb[124].mxu0 }
 0x383   :  { %v1509_v60 = vadd.f32 %v1508_v59, %v2880_v34  ;;  %v1510_v61 = vpop.f32.mrb[125].mxu0 }
 0x384   :  { %v1511_v62 = vadd.f32 %v1510_v61, %v2883_v12  ;;  %v1512_v63 = vpop.f32.mrb[126].mxu0  ;;  %1892 = vmatprep.mubr.bf16.mxu1 %v1610_v58 }
 0x385   :  { %v1513_v1 = vadd.f32 %v1512_v63, %v2880_v34  ;;  %v1514_v2 = vpop.f32.mrb[127].mxu0  ;;  %1893 = vmatmul.mubr.bf16.gmra.mrb[112].mxu1 %v1609_v57  ;;  %v1577_v5 = vmax.f32 %v1509_v60, 0.0 }
 0x386   :  { %v1515_v3 = vadd.f32 %v1514_v2, %v2883_v12  ;;  %v1578_v7 = vmax.f32 %v1511_v62, 0.0 }
 0x387   :  { %v1579_v6 = vmax.f32 %v1513_v1, 0.0 }
 0x388   :  { %v1580_v9 = vmax.f32 %v1515_v3, 0.0 }
 0x389   :  { %v1611_v10 = vpack.c.bf16 %v1579_v6, %v1577_v5 }
 0x38a   :  { %v1612_v11 = vpack.c.bf16 %v1580_v9, %v1578_v7 }
 0x38c   :  { %1900 = vmatprep.mubr.bf16.mxu1 %v1612_v11 }
 0x38d   :  { %1901 = vmatmul.mubr.bf16.gmra.mrb[116].mxu1 %v1611_v10 }
 0x3e8   :  { %v2158_v15 = vpop.f32.mrb[128].mxu0 }
 0x3e9   :  { %v2159_v34 = vpop.f32.mrb[129].mxu0 }
 0x3ea   :  { %v2160_v12 = vadd.f32 %v2159_v34, %v2158_v15  ;;  %v2161_v17 = vpop.f32.mrb[130].mxu0 }
 0x3eb   :  { %v2162_v18 = vpop.f32.mrb[131].mxu0 }
 0x3ec   :  { %v1783_v19 = vadd.f32 %v2160_v12, %v2953_v16  ;;  %v2163_v20 = vadd.f32 %v2162_v18, %v2161_v17 }
 0x3ee   :  { %v1914_v4 = vmax.f32 %v1783_v19, -7.0  ;;  %v1786_v22 = vadd.f32 %v2163_v20, %v2953_v16 }
 0x3f0   :  { %v1946_v23 = vsel %vm2956_vm2, %v1914_v4, %v1783_v19  ;;  %v1915_v24 = vmax.f32 %v1786_v22, -7.0  ;;  %v2164_v25 = vpop.f32.mrb[132].mxu0 }
 0x3f1   :  { %1978 = vst [vmem:[#allocation11] sm:$0xff] %v1946_v23  ;;  %v2165_v26 = vpop.f32.mrb[133].mxu0 }
 0x3f2   :  { %v1947_v27 = vsel %vm2956_vm2, %v1915_v24, %v1786_v22  ;;  %v2166_v28 = vadd.f32 %v2165_v26, %v2164_v25  ;;  %v2167_v29 = vpop.f32.mrb[134].mxu0 }
 0x3f3   :  { %1979 = vst [vmem:[#allocation11 + $0x8] sm:$0xff] %v1947_v27  ;;  %v2168_v30 = vpop.f32.mrb[135].mxu0 }
 0x3f4   :  { %v1791_v31 = vadd.f32 %v2166_v28, %v2953_v16  ;;  %v2169_v32 = vadd.f32 %v2168_v30, %v2167_v29 }
 0x3f6   :  { %v1916_v33 = vmax.f32 %v1791_v31, -7.0  ;;  %v1794_v35 = vadd.f32 %v2169_v32, %v2953_v16 }
 0x3f8   :  { %v1948_v13 = vsel %vm2956_vm2, %v1916_v33, %v1791_v31  ;;  %v1917_v36 = vmax.f32 %v1794_v35, -7.0  ;;  %v2170_v37 = vpop.f32.mrb[64].mxu1 }
 0x3f9   :  { %1980 = vst [vmem:[#allocation11 + $0x10] sm:$0xff] %v1948_v13  ;;  %v2171_v38 = vpop.f32.mrb[65].mxu1 }
 0x3fa   :  { %v1949_v39 = vsel %vm2956_vm2, %v1917_v36, %v1794_v35  ;;  %v2172_v40 = vadd.f32 %v2171_v38, %v2170_v37  ;;  %v2173_v41 = vpop.f32.mrb[66].mxu1 }
 0x3fb   :  { %1981 = vst [vmem:[#allocation11 + $0x18] sm:$0xff] %v1949_v39  ;;  %v2174_v42 = vpop.f32.mrb[67].mxu1 }
 0x3fc   :  { %v1799_v43 = vadd.f32 %v2172_v40, %v2953_v16  ;;  %v2175_v44 = vadd.f32 %v2174_v42, %v2173_v41 }
 0x3fe   :  { %v1918_v8 = vmax.f32 %v1799_v43, -7.0  ;;  %v1802_v45 = vadd.f32 %v2175_v44, %v2953_v16 }
 0x400   :  { %v1950_v46 = vsel %vm2956_vm2, %v1918_v8, %v1799_v43  ;;  %v1919_v0 = vmax.f32 %v1802_v45, -7.0  ;;  %v2176_v47 = vpop.f32.mrb[68].mxu1 }
 0x401   :  { %1982 = vst [vmem:[#allocation11 + $0x20] sm:$0xff] %v1950_v46  ;;  %v2177_v48 = vpop.f32.mrb[69].mxu1 }
 0x402   :  { %v1951_v49 = vsel %vm2956_vm2, %v1919_v0, %v1802_v45  ;;  %v2178_v50 = vadd.f32 %v2177_v48, %v2176_v47  ;;  %v2179_v51 = vpop.f32.mrb[70].mxu1 }
 0x403   :  { %1983 = vst [vmem:[#allocation11 + $0x28] sm:$0xff] %v1951_v49  ;;  %v2180_v52 = vpop.f32.mrb[71].mxu1 }
 0x404   :  { %v1807_v53 = vadd.f32 %v2178_v50, %v2953_v16  ;;  %v2181_v54 = vadd.f32 %v2180_v52, %v2179_v51 }
 0x406   :  { %v1920_v55 = vmax.f32 %v1807_v53, -7.0  ;;  %v1810_v56 = vadd.f32 %v2181_v54, %v2953_v16 }
 0x408   :  { %v1952_v57 = vsel %vm2956_vm2, %v1920_v55, %v1807_v53  ;;  %v1921_v58 = vmax.f32 %v1810_v56, -7.0  ;;  %v2182_v59 = vpop.f32.mrb[72].mxu1 }
 0x409   :  { %1984 = vst [vmem:[#allocation11 + $0x30] sm:$0xff] %v1952_v57  ;;  %v2183_v60 = vpop.f32.mrb[73].mxu1 }
 0x40a   :  { %v1953_v61 = vsel %vm2956_vm2, %v1921_v58, %v1810_v56  ;;  %v2184_v62 = vadd.f32 %v2183_v60, %v2182_v59  ;;  %v2185_v63 = vpop.f32.mrb[74].mxu1 }
 0x40b   :  { %1985 = vst [vmem:[#allocation11 + $0x38] sm:$0xff] %v1953_v61  ;;  %v2186_v1 = vpop.f32.mrb[75].mxu1 }
 0x40c   :  { %v1815_v2 = vadd.f32 %v2184_v62, %v2953_v16  ;;  %v2187_v3 = vadd.f32 %v2186_v1, %v2185_v63 }
 0x40e   :  { %v1922_v5 = vmax.f32 %v1815_v2, -7.0  ;;  %v1818_v6 = vadd.f32 %v2187_v3, %v2953_v16 }
 0x410   :  { %v1954_v7 = vsel %vm2956_vm2, %v1922_v5, %v1815_v2  ;;  %v1923_v9 = vmax.f32 %v1818_v6, -7.0  ;;  %v2188_v10 = vpop.f32.mrb[76].mxu1 }
 0x411   :  { %1986 = vst [vmem:[#allocation11 + $0x40] sm:$0xff] %v1954_v7  ;;  %v2189_v11 = vpop.f32.mrb[77].mxu1 }
 0x412   :  { %v1955_v14 = vsel %vm2956_vm2, %v1923_v9, %v1818_v6  ;;  %v2190_v15 = vadd.f32 %v2189_v11, %v2188_v10  ;;  %v2191_v34 = vpop.f32.mrb[78].mxu1 }
 0x413   :  { %1987 = vst [vmem:[#allocation11 + $0x48] sm:$0xff] %v1955_v14  ;;  %v2192_v12 = vpop.f32.mrb[79].mxu1 }
 0x414   :  { %v1823_v17 = vadd.f32 %v2190_v15, %v2953_v16  ;;  %v2193_v18 = vadd.f32 %v2192_v12, %v2191_v34 }
 0x416   :  { %v1924_v19 = vmax.f32 %v1823_v17, -7.0  ;;  %v1826_v20 = vadd.f32 %v2193_v18, %v2953_v16 }
 0x418   :  { %v1956_v4 = vsel %vm2956_vm2, %v1924_v19, %v1823_v17  ;;  %v1925_v22 = vmax.f32 %v1826_v20, -7.0  ;;  %v2194_v23 = vpop.f32.mrb[80].mxu1 }
 0x419   :  { %1988 = vst [vmem:[#allocation11 + $0x50] sm:$0xff] %v1956_v4  ;;  %v2195_v24 = vpop.f32.mrb[81].mxu1 }
 0x41a   :  { %v1957_v25 = vsel %vm2956_vm2, %v1925_v22, %v1826_v20  ;;  %v2196_v26 = vadd.f32 %v2195_v24, %v2194_v23  ;;  %v2197_v27 = vpop.f32.mrb[82].mxu1 }
 0x41b   :  { %1989 = vst [vmem:[#allocation11 + $0x58] sm:$0xff] %v1957_v25  ;;  %v2198_v28 = vpop.f32.mrb[83].mxu1 }
 0x41c   :  { %v1831_v29 = vadd.f32 %v2196_v26, %v2953_v16  ;;  %v2199_v30 = vadd.f32 %v2198_v28, %v2197_v27 }
 0x41e   :  { %v1926_v31 = vmax.f32 %v1831_v29, -7.0  ;;  %v1834_v32 = vadd.f32 %v2199_v30, %v2953_v16 }
 0x420   :  { %v1958_v33 = vsel %vm2956_vm2, %v1926_v31, %v1831_v29  ;;  %v1927_v35 = vmax.f32 %v1834_v32, -7.0  ;;  %v2200_v13 = vpop.f32.mrb[84].mxu1 }
 0x421   :  { %1990 = vst [vmem:[#allocation11 + $0x60] sm:$0xff] %v1958_v33  ;;  %v2201_v36 = vpop.f32.mrb[85].mxu1 }
 0x422   :  { %v1959_v37 = vsel %vm2956_vm2, %v1927_v35, %v1834_v32  ;;  %v2202_v38 = vadd.f32 %v2201_v36, %v2200_v13  ;;  %v2203_v39 = vpop.f32.mrb[86].mxu1 }
 0x423   :  { %1991 = vst [vmem:[#allocation11 + $0x68] sm:$0xff] %v1959_v37  ;;  %v2204_v40 = vpop.f32.mrb[87].mxu1 }
 0x424   :  { %v1839_v41 = vadd.f32 %v2202_v38, %v2953_v16  ;;  %v2205_v42 = vadd.f32 %v2204_v40, %v2203_v39 }
 0x426   :  { %v1928_v43 = vmax.f32 %v1839_v41, -7.0  ;;  %v1842_v44 = vadd.f32 %v2205_v42, %v2953_v16 }
 0x428   :  { %v1960_v8 = vsel %vm2956_vm2, %v1928_v43, %v1839_v41  ;;  %v1929_v45 = vmax.f32 %v1842_v44, -7.0  ;;  %v2206_v46 = vpop.f32.mrb[88].mxu1 }
 0x429   :  { %1992 = vst [vmem:[#allocation11 + $0x70] sm:$0xff] %v1960_v8  ;;  %v2207_v0 = vpop.f32.mrb[89].mxu1 }
 0x42a   :  { %v1961_v47 = vsel %vm2956_vm2, %v1929_v45, %v1842_v44  ;;  %v2208_v48 = vadd.f32 %v2207_v0, %v2206_v46  ;;  %v2209_v49 = vpop.f32.mrb[90].mxu1 }
 0x42b   :  { %1993 = vst [vmem:[#allocation11 + $0x78] sm:$0xff] %v1961_v47  ;;  %v2210_v50 = vpop.f32.mrb[91].mxu1 }
 0x42c   :  { %v1847_v51 = vadd.f32 %v2208_v48, %v2953_v16  ;;  %v2211_v52 = vadd.f32 %v2210_v50, %v2209_v49 }
 0x42e   :  { %v1930_v53 = vmax.f32 %v1847_v51, -7.0  ;;  %v1850_v54 = vadd.f32 %v2211_v52, %v2953_v16 }
 0x430   :  { %v1962_v55 = vsel %vm2956_vm2, %v1930_v53, %v1847_v51  ;;  %v1931_v56 = vmax.f32 %v1850_v54, -7.0  ;;  %v2212_v57 = vpop.f32.mrb[92].mxu1 }
 0x431   :  { %1994 = vst [vmem:[#allocation11 + $0x80] sm:$0xff] %v1962_v55  ;;  %v2213_v58 = vpop.f32.mrb[93].mxu1 }
 0x432   :  { %v1963_v59 = vsel %vm2956_vm2, %v1931_v56, %v1850_v54  ;;  %v2214_v60 = vadd.f32 %v2213_v58, %v2212_v57  ;;  %v2215_v61 = vpop.f32.mrb[94].mxu1 }
 0x433   :  { %1995 = vst [vmem:[#allocation11 + $0x88] sm:$0xff] %v1963_v59  ;;  %v2216_v62 = vpop.f32.mrb[95].mxu1 }
 0x434   :  { %v1855_v63 = vadd.f32 %v2214_v60, %v2953_v16  ;;  %v2217_v1 = vadd.f32 %v2216_v62, %v2215_v61 }
 0x436   :  { %v1932_v2 = vmax.f32 %v1855_v63, -7.0  ;;  %v1858_v3 = vadd.f32 %v2217_v1, %v2953_v16 }
 0x438   :  { %v1964_v5 = vsel %vm2956_vm2, %v1932_v2, %v1855_v63  ;;  %v1933_v6 = vmax.f32 %v1858_v3, -7.0  ;;  %v2218_v7 = vpop.f32.mrb[96].mxu1 }
 0x439   :  { %1996 = vst [vmem:[#allocation11 + $0x90] sm:$0xff] %v1964_v5  ;;  %v2219_v9 = vpop.f32.mrb[97].mxu1 }
 0x43a   :  { %v1965_v10 = vsel %vm2956_vm2, %v1933_v6, %v1858_v3  ;;  %v2220_v11 = vadd.f32 %v2219_v9, %v2218_v7  ;;  %v2221_v14 = vpop.f32.mrb[98].mxu1 }
 0x43b   :  { %1997 = vst [vmem:[#allocation11 + $0x98] sm:$0xff] %v1965_v10  ;;  %v2222_v15 = vpop.f32.mrb[99].mxu1 }
 0x43c   :  { %v1863_v34 = vadd.f32 %v2220_v11, %v2953_v16  ;;  %v2223_v12 = vadd.f32 %v2222_v15, %v2221_v14 }
 0x43e   :  { %v1934_v17 = vmax.f32 %v1863_v34, -7.0  ;;  %v1866_v18 = vadd.f32 %v2223_v12, %v2953_v16 }
 0x440   :  { %v1966_v19 = vsel %vm2956_vm2, %v1934_v17, %v1863_v34  ;;  %v1935_v20 = vmax.f32 %v1866_v18, -7.0  ;;  %v2224_v4 = vpop.f32.mrb[100].mxu1 }
 0x441   :  { %1998 = vst [vmem:[#allocation11 + $0xa0] sm:$0xff] %v1966_v19  ;;  %v2225_v22 = vpop.f32.mrb[101].mxu1 }
 0x442   :  { %v1967_v23 = vsel %vm2956_vm2, %v1935_v20, %v1866_v18  ;;  %v2226_v24 = vadd.f32 %v2225_v22, %v2224_v4  ;;  %v2227_v25 = vpop.f32.mrb[102].mxu1 }
 0x443   :  { %1999 = vst [vmem:[#allocation11 + $0xa8] sm:$0xff] %v1967_v23  ;;  %v2228_v26 = vpop.f32.mrb[103].mxu1 }
 0x444   :  { %v1871_v27 = vadd.f32 %v2226_v24, %v2953_v16  ;;  %v2229_v28 = vadd.f32 %v2228_v26, %v2227_v25 }
 0x446   :  { %v1936_v29 = vmax.f32 %v1871_v27, -7.0  ;;  %v1874_v30 = vadd.f32 %v2229_v28, %v2953_v16 }
 0x448   :  { %v1968_v31 = vsel %vm2956_vm2, %v1936_v29, %v1871_v27  ;;  %v1937_v32 = vmax.f32 %v1874_v30, -7.0  ;;  %v2230_v33 = vpop.f32.mrb[104].mxu1 }
 0x449   :  { %2000 = vst [vmem:[#allocation11 + $0xb0] sm:$0xff] %v1968_v31  ;;  %v2231_v35 = vpop.f32.mrb[105].mxu1 }
 0x44a   :  { %v1969_v13 = vsel %vm2956_vm2, %v1937_v32, %v1874_v30  ;;  %v2232_v36 = vadd.f32 %v2231_v35, %v2230_v33  ;;  %v2233_v37 = vpop.f32.mrb[106].mxu1 }
 0x44b   :  { %2001 = vst [vmem:[#allocation11 + $0xb8] sm:$0xff] %v1969_v13  ;;  %v2234_v38 = vpop.f32.mrb[107].mxu1 }
 0x44c   :  { %v1879_v39 = vadd.f32 %v2232_v36, %v2953_v16  ;;  %v2235_v40 = vadd.f32 %v2234_v38, %v2233_v37 }
 0x44e   :  { %v1938_v41 = vmax.f32 %v1879_v39, -7.0  ;;  %v1882_v42 = vadd.f32 %v2235_v40, %v2953_v16 }
 0x450   :  { %v1970_v43 = vsel %vm2956_vm2, %v1938_v41, %v1879_v39  ;;  %v1939_v44 = vmax.f32 %v1882_v42, -7.0  ;;  %v2236_v8 = vpop.f32.mrb[108].mxu1 }
 0x451   :  { %2002 = vst [vmem:[#allocation11 + $0xc0] sm:$0xff] %v1970_v43  ;;  %v2237_v45 = vpop.f32.mrb[109].mxu1 }
 0x452   :  { %v1971_v46 = vsel %vm2956_vm2, %v1939_v44, %v1882_v42  ;;  %v2238_v0 = vadd.f32 %v2237_v45, %v2236_v8  ;;  %v2239_v47 = vpop.f32.mrb[110].mxu1 }
 0x453   :  { %2003 = vst [vmem:[#allocation11 + $0xc8] sm:$0xff] %v1971_v46  ;;  %v2240_v48 = vpop.f32.mrb[111].mxu1 }
 0x454   :  { %v1887_v49 = vadd.f32 %v2238_v0, %v2953_v16  ;;  %v2241_v50 = vadd.f32 %v2240_v48, %v2239_v47 }
 0x456   :  { %v1940_v51 = vmax.f32 %v1887_v49, -7.0  ;;  %v1890_v52 = vadd.f32 %v2241_v50, %v2953_v16 }
 0x458   :  { %v1972_v53 = vsel %vm2956_vm2, %v1940_v51, %v1887_v49  ;;  %v1941_v54 = vmax.f32 %v1890_v52, -7.0  ;;  %v2242_v55 = vpop.f32.mrb[112].mxu1 }
 0x459   :  { %2004 = vst [vmem:[#allocation11 + $0xd0] sm:$0xff] %v1972_v53  ;;  %v2243_v56 = vpop.f32.mrb[113].mxu1 }
 0x45a   :  { %v1973_v57 = vsel %vm2956_vm2, %v1941_v54, %v1890_v52  ;;  %v2244_v58 = vadd.f32 %v2243_v56, %v2242_v55  ;;  %v2245_v59 = vpop.f32.mrb[114].mxu1 }
 0x45b   :  { %2005 = vst [vmem:[#allocation11 + $0xd8] sm:$0xff] %v1973_v57  ;;  %v2246_v60 = vpop.f32.mrb[115].mxu1 }
 0x45c   :  { %v1895_v61 = vadd.f32 %v2244_v58, %v2953_v16  ;;  %v2247_v62 = vadd.f32 %v2246_v60, %v2245_v59 }
 0x45e   :  { %v1942_v63 = vmax.f32 %v1895_v61, -7.0  ;;  %v1898_v1 = vadd.f32 %v2247_v62, %v2953_v16 }
 0x460   :  { %v1974_v2 = vsel %vm2956_vm2, %v1942_v63, %v1895_v61  ;;  %v1943_v3 = vmax.f32 %v1898_v1, -7.0  ;;  %v2248_v5 = vpop.f32.mrb[116].mxu1 }
 0x461   :  { %2006 = vst [vmem:[#allocation11 + $0xe0] sm:$0xff] %v1974_v2  ;;  %v2249_v6 = vpop.f32.mrb[117].mxu1 }
 0x462   :  { %v1975_v7 = vsel %vm2956_vm2, %v1943_v3, %v1898_v1  ;;  %v2250_v9 = vadd.f32 %v2249_v6, %v2248_v5  ;;  %v2251_v10 = vpop.f32.mrb[118].mxu1 }
 0x463   :  { %2007 = vst [vmem:[#allocation11 + $0xe8] sm:$0xff] %v1975_v7  ;;  %v2252_v11 = vpop.f32.mrb[119].mxu1 }
 0x464   :  { %v1903_v14 = vadd.f32 %v2250_v9, %v2953_v16  ;;  %v2253_v15 = vadd.f32 %v2252_v11, %v2251_v10 }
 0x466   :  { %v1944_v34 = vmax.f32 %v1903_v14, -7.0  ;;  %v1906_v12 = vadd.f32 %v2253_v15, %v2953_v16 }
 0x468   :  { %v1976_v17 = vsel %vm2956_vm2, %v1944_v34, %v1903_v14  ;;  %v1945_v18 = vmax.f32 %v1906_v12, -7.0 }
 0x469   :  { %2008 = vst [vmem:[#allocation11 + $0xf0] sm:$0xff] %v1976_v17 }
 0x46a   :  { %v1977_v19 = vsel %vm2956_vm2, %v1945_v18, %v1906_v12 }
 0x46b   :  { %2009 = vst [vmem:[#allocation11 + $0xf8] sm:$0xff] %v1977_v19 }
 0x46c   :  { %2554 = shalt.err (!%p2551_p2)
}
 0x46d   :  { %s2555_s16 = scalar_lea.hbm %s3079_s9, 4096 }
 0x46e   :  { %p2556_p3 = scmp.ne.s32.totalorder %s3079_s9, %s2555_s16  ;;  %p2559_p4 = scmp.lt.u32.totalorder %s2555_s16, %s3079_s9 }
 0x470   :  { %p2561_p5 = pnand %p2559_p4, %p2556_p3 }
 0x472   :  { %2564 = shalt.err (!%p2561_p5)
}
 0x473   :  { %2021 = dma.vmem_to_hbm [thread:$0]  %s2016_s1, 4096, %s3079_s9, [#allocation4], %s2574_s19, %s2574_s19, %s2575_s20  }
 0x474   :  { %2571 = dma.done.wait [#allocation4], 4096  }
 0x475   :  { %2572 = vsyncadd [#allocation4], 4294963200 }
 0x476   :  { %2025 = vsyncpa [#allocation3], 1 }
 0x477   :  { %2026 = vsyncpa [#allocation6], 1 }
 0x478   :  { %2027 = vsyncpa [#allocation9], 1 }
 0x479   :  { %2028 = vsyncpa [#allocation4], 1 }

</bundles_post_ra>
